<compile_context>
chip_gen: v6e
topology: v6e:2x2x1
jax: 0.10.0
libtpu: 0.0.40
codegen_flags: <defaults>
</compile_context>

<pallas_src>
import math
import functools
import numpy as np
import jax
import jax.numpy as jnp
from jax.experimental import pallas as pl
from jax.experimental.pallas import tpu as pltpu

MINUS_INF = float(jnp.finfo(jnp.float32).min)
LN_EPS = 1e-5


def _layernorm(x, gamma, beta):
    mu = jnp.mean(x, axis=-1, keepdims=True)
    var = jnp.mean(jnp.square(x - mu), axis=-1, keepdims=True)
    return (x - mu) * jax.lax.rsqrt(var + LN_EPS) * gamma + beta


# ----------------------------------------------------------------------------
# Decoder layer kernel: attention (RoPE) + residual + LN + gated MLP + LN
# ----------------------------------------------------------------------------
def decoder_layer_kernel(x_ref, cos_ref, sins_ref, posc_ref, posr_ref,
                         wq_ref, wk_ref, wv_ref, wo_ref,
                         g1_ref, b1_ref, wg_ref, wu_ref, wd_ref,
                         g2_ref, b2_ref, y_ref, *, num_heads, head_dim):
    f32 = jnp.float32
    bf16 = jnp.bfloat16

    x = x_ref[0]            # (b_n, H)  bf16
    cos = cos_ref[0]        # (b_n, Dh) f32
    sins = sins_ref[0]      # (b_n, Dh) f32  (rotation sign folded in)

    # Attention mask rebuilt in-kernel (removes the (b_n,b_n) f32 DMA stream):
    # masked <=> pos[query] < pos_eff[key]; pos_eff is a huge sentinel for
    # padded key slots, which subsumes the pad mask.
    mask = jnp.where(posc_ref[0] < posr_ref[0], MINUS_INF, 0.0)   # (b_n, b_n) f32

    scale = 1.0 / math.sqrt(head_dim)
    q = jnp.dot(x, wq_ref[...], preferred_element_type=f32) * scale  # fold scale here
    k = jnp.dot(x, wk_ref[...], preferred_element_type=f32)
    v = jnp.dot(x, wv_ref[...], preferred_element_type=f32)

    half = head_dim // 2

    def rotate_half(t):
        # Rotation sign lives in `sins`, so this is a pure (unsigned) rotate.
        if head_dim % 128 == 0:
            return pltpu.roll(t, half, axis=-1)       # XLU rotate, lane aligned
        return jnp.concatenate([t[:, half:], t[:, :half]], axis=-1)

    def rope(t):
        return t * cos + rotate_half(t) * sins

    # Per-head attention; accumulate directly into the o_proj output instead of
    # concatenating heads along the lane dim.
    acc = jnp.zeros((x.shape[0], wo_ref.shape[1]), f32)
    for h in range(num_heads):
        sl = slice(h * head_dim, (h + 1) * head_dim)
        qh = rope(q[:, sl])
        kh = rope(k[:, sl])
        logits = jax.lax.dot_general(qh, kh, (((1,), (1,)), ((), ())),
                                     preferred_element_type=f32) + mask
        m = jnp.max(logits, axis=-1, keepdims=True)
        e = jnp.exp(logits - m)
        p = e * pl.reciprocal(jnp.sum(e, axis=-1, keepdims=True), approx=True)
        oh = jnp.dot(p.astype(bf16), v[:, sl].astype(bf16),
                     preferred_element_type=f32)
        acc = acc + jnp.dot(oh.astype(bf16), wo_ref[sl, :],
                            preferred_element_type=f32)

    h1 = x.astype(f32) + acc                              # residual (f32)
    ln1 = _layernorm(h1, g1_ref[0], b1_ref[0])            # normalization_pre
    ln1_b = ln1.astype(bf16)
    gate = jnp.dot(ln1_b, wg_ref[...], preferred_element_type=f32)
    up = jnp.dot(ln1_b, wu_ref[...], preferred_element_type=f32)
    act = gate * pl.reciprocal(1.0 + jnp.exp(-gate), approx=True)   # SiLU via EUP
    mlp = jnp.dot((act * up).astype(bf16), wd_ref[...], preferred_element_type=f32)
    h2 = h1 + mlp                                         # residual
    y_ref[0] = _layernorm(h2, g2_ref[0], b2_ref[0]).astype(y_ref.dtype)


def decoder_layer(x, cos, sins, pos_col, pos_row, lp):
    bsz, b_n, H = x.shape
    Dh = cos.shape[-1]
    HD = lp['wq'].shape[1]
    NH = HD // Dh
    I = lp['wg'].shape[1]

    kernel = functools.partial(decoder_layer_kernel, num_heads=NH, head_dim=Dh)

    def per_b(shape):
        return pl.BlockSpec(shape, lambda b: (b, 0, 0))

    def full2d(shape):
        return pl.BlockSpec(shape, lambda b: (0, 0))

    return pl.pallas_call(
        kernel,
        out_shape=jax.ShapeDtypeStruct((bsz, b_n, H), jnp.bfloat16),
        grid=(bsz,),
        in_specs=[
            per_b((1, b_n, H)),
            per_b((1, b_n, Dh)),
            per_b((1, b_n, Dh)),
            per_b((1, b_n, 1)),     # query positions  (int32)
            per_b((1, 1, b_n)),     # key positions with pad sentinel (int32)
            full2d((H, HD)), full2d((H, HD)), full2d((H, HD)), full2d((HD, H)),
            full2d((1, H)), full2d((1, H)),
            full2d((H, I)), full2d((H, I)), full2d((I, H)),
            full2d((1, H)), full2d((1, H)),
        ],
        out_specs=per_b((1, b_n, H)),
        compiler_params=pltpu.CompilerParams(dimension_semantics=("parallel",)),
    )(x, cos, sins, pos_col, pos_row,
      lp['wq'], lp['wk'], lp['wv'], lp['wo'],
      lp['g1'], lp['b1'], lp['wg'], lp['wu'], lp['wd'],
      lp['g2'], lp['b2'])


# ----------------------------------------------------------------------------
# Pooling (index_add as one-hot matmul, column-vector score) + output head
# ----------------------------------------------------------------------------
def pool_head_kernel(x_ref, pmask_ref, onehot_ref, wh_ref, bh_ref, o_ref):
    f32 = jnp.float32
    x = x_ref[0].astype(f32)      # (b_n, H)
    pmask = pmask_ref[0]          # (b_n, 1)
    onehot = onehot_ref[0]        # (b_n, b_m)

    # pooling_score is constant along H -> keep it as a (b_n, 1) column.
    score = jnp.exp(1.0 + pmask)                                   # (b_n, 1)
    colsum = jnp.sum(onehot * score, axis=0, keepdims=True)        # (1, b_m)
    denom = jnp.sum(onehot * colsum, axis=1, keepdims=True)        # (b_n, 1)
    # Guard 0/0 (rows whose whole pooled slot is fully masked); score is 0
    # there so the contribution stays 0 instead of NaN.
    probs = score * pl.reciprocal(jnp.maximum(denom, 1e-30), approx=True)
    pooled = jax.lax.dot_general(onehot, x * probs, (((0,), (0,)), ((), ())),
                                 preferred_element_type=f32)       # (b_m, H)
    o_ref[0] = jnp.dot(pooled.astype(wh_ref.dtype), wh_ref[...],
                       preferred_element_type=f32) + bh_ref[0]


def pool_head(x, pmask, onehot, wh, bh):
    bsz, b_n, H = x.shape
    b_m = onehot.shape[-1]
    O = wh.shape[-1]
    O_pad = ((O + 127) // 128) * 128          # lane-dense output stores
    wh_p = jnp.pad(wh, ((0, 0), (0, O_pad - O)))
    bh_p = jnp.pad(bh, ((0, 0), (0, O_pad - O)))
    out = pl.pallas_call(
        pool_head_kernel,
        out_shape=jax.ShapeDtypeStruct((bsz, b_m, O_pad), jnp.float32),
        grid=(bsz,),
        in_specs=[
            pl.BlockSpec((1, b_n, H), lambda b: (b, 0, 0)),
            pl.BlockSpec((1, b_n, 1), lambda b: (b, 0, 0)),
            pl.BlockSpec((1, b_n, b_m), lambda b: (b, 0, 0)),
            pl.BlockSpec((H, O_pad), lambda b: (0, 0)),
            pl.BlockSpec((1, O_pad), lambda b: (0, 0)),
        ],
        out_specs=pl.BlockSpec((1, b_m, O_pad), lambda b: (b, 0, 0)),
        compiler_params=pltpu.CompilerParams(dimension_semantics=("parallel",)),
    )(x, pmask, onehot, wh_p, bh_p)
    return out[:, :, :O]


# ----------------------------------------------------------------------------
# Host-side glue: rotary tables, position vectors, parameter init, forward
# ----------------------------------------------------------------------------
def build_rope(positions, head_dim, base):
    inv_freq = 1.0 / (base ** (jnp.arange(0, head_dim, 2, dtype=jnp.float32) / head_dim))
    freqs = positions.astype(jnp.float32)[..., None] * inv_freq       # (B, N, Dh/2)
    cos = jnp.cos(jnp.concatenate([freqs, freqs], axis=-1))           # (B, N, Dh)
    s = jnp.sin(freqs)
    sin_signed = jnp.concatenate([-s, s], axis=-1)                    # rotation sign folded
    return cos, sin_signed


def build_mask(positions, lengths, b_n):
    # Reference-only (the kernel rebuilds its mask in-kernel).
    pad = jnp.where(jnp.arange(b_n)[None, :] < lengths[:, None], 0.0, MINUS_INF)
    dec = jnp.where(positions[:, :, None] < positions[:, None, :], MINUS_INF, 0.0)
    return (pad[:, None, :] + dec).astype(jnp.float32)                # (B, N, N)


def init_params(key, cfg):
    H, NH, Dh = cfg['hidden_size'], cfg['num_heads'], cfg['head_dim']
    I, V, O = cfg['mlp_intermediate_size'], cfg['vocab_size'], cfg['output_size']
    HD = NH * Dh
    keys = jax.random.split(key, 3 + cfg['num_layers'])

    def rnd_bf16(k, shape):
        return (0.05 * jax.random.normal(k, shape, jnp.float32)).astype(jnp.bfloat16)

    params = {'emb': rnd_bf16(keys[0], (V, H)),
              'wh': rnd_bf16(keys[1], (H, O)),
              'bh': 0.05 * jax.random.normal(keys[2], (1, O), jnp.float32),
              'layers': []}
    for li in range(cfg['num_layers']):
        lk = jax.random.split(keys[3 + li], 7)
        params['layers'].append({
            'wq': rnd_bf16(lk[0], (H, HD)), 'wk': rnd_bf16(lk[1], (H, HD)),
            'wv': rnd_bf16(lk[2], (H, HD)), 'wo': rnd_bf16(lk[3], (HD, H)),
            'wg': rnd_bf16(lk[4], (H, I)), 'wu': rnd_bf16(lk[5], (H, I)),
            'wd': rnd_bf16(lk[6], (I, H)),
            'g1': jnp.ones((1, H), jnp.float32), 'b1': jnp.zeros((1, H), jnp.float32),
            'g2': jnp.ones((1, H), jnp.float32), 'b2': jnp.zeros((1, H), jnp.float32),
        })
    return params


def kelso_predictor_forward(tokens, positions, lengths, params, cfg):
    bsz, b_n = tokens.shape
    # Single host copy of positions for all variable-length bookkeeping
    # (no per-batch device->host syncs in the return path).
    pos_np = np.asarray(positions)
    b_m = int(pos_np.max()) + 1
    out_lens = (pos_np.max(axis=1) + 1).tolist()

    x = params['emb'][tokens]                                    # bf16 embedding gather (glue)
    cos, sins = build_rope(positions, cfg['head_dim'], cfg['pos_base'])
    pos_col = positions[:, :, None].astype(jnp.int32)            # (B, b_n, 1) query pos
    valid_col = jnp.arange(b_n)[None, :] < lengths[:, None]
    pos_row = jnp.where(valid_col, positions, jnp.int32(2 ** 30))
    pos_row = pos_row.astype(jnp.int32)[:, None, :]              # (B, 1, b_n) key pos (+sentinel)

    for lp in params['layers']:
        x = decoder_layer(x, cos, sins, pos_col, pos_row, lp)
    # dropout p=0.0 -> identity

    pmask = jnp.where((positions == -1)[..., None], MINUS_INF, 0.0).astype(jnp.float32)
    ids = jnp.clip(positions, 0)
    onehot = (ids[..., None] == jnp.arange(b_m)[None, None, :]).astype(jnp.float32)
    out = pool_head(x, pmask, onehot, params['wh'], params['bh'])   # (B, b_m, O)
    return [out[b, :out_lens[b]] for b in range(bsz)]


# Pure-JAX reference (mirrors the PyTorch module; bf16 weights + bf16
# inter-layer activations mirrored, math in f32) for correctness checking.
def reference_forward(tokens, positions, lengths, params, cfg):
    NH, Dh = cfg['num_heads'], cfg['head_dim']
    bsz, b_n = tokens.shape
    H = cfg['hidden_size']
    f32 = jnp.float32
    x = params['emb'][tokens].astype(f32)
    inv_freq = 1.0 / (cfg['pos_base'] ** (jnp.arange(0, Dh, 2, dtype=f32) / Dh))
    freqs = positions.astype(f32)[..., None] * inv_freq
    emb = jnp.concatenate([freqs, freqs], axis=-1)
    cos, sin = jnp.cos(emb), jnp.sin(emb)
    mask = build_mask(positions, lengths, b_n)
    for lp in params['layers']:
        wq, wk, wv, wo = (lp[n].astype(f32) for n in ('wq', 'wk', 'wv', 'wo'))
        wg, wu, wd = (lp[n].astype(f32) for n in ('wg', 'wu', 'wd'))

        def split(t):
            return t.reshape(bsz, b_n, NH, Dh).transpose(0, 2, 1, 3)
        q, k, v = split(x @ wq), split(x @ wk), split(x @ wv)
        c, s = cos[:, None], sin[:, None]

        def rope(t):
            half = Dh // 2
            rot = jnp.concatenate([-t[..., half:], t[..., :half]], axis=-1)
            return t * c + rot * s
        q, k = rope(q), rope(k)
        logits = jnp.einsum('bhqd,bhkd->bhqk', q, k) / math.sqrt(Dh) + mask[:, None]
        w = jax.nn.softmax(logits, axis=-1)
        o = jnp.einsum('bhqk,bhkd->bhqd', w, v).transpose(0, 2, 1, 3).reshape(bsz, b_n, NH * Dh)
        h1 = x + o @ wo
        ln1 = _layernorm(h1, lp['g1'][0], lp['b1'][0])
        mlp = (jax.nn.silu(ln1 @ wg) * (ln1 @ wu)) @ wd
        x = _layernorm(h1 + mlp, lp['g2'][0], lp['b2'][0])
        x = x.astype(jnp.bfloat16).astype(f32)     # mirror bf16 inter-layer activations
    pos_np = np.asarray(positions)
    b_m = int(pos_np.max()) + 1
    pmask = jnp.where((positions == -1)[..., None], MINUS_INF, 0.0)
    ids = jnp.clip(positions, 0)
    onehot = (ids[..., None] == jnp.arange(b_m)[None, None, :]).astype(f32)
    score = jnp.exp(jnp.ones((bsz, b_n, H), f32) + pmask)
    sums = jnp.einsum('bnm,bnh->bmh', onehot, score)
    denom = jnp.einsum('bnm,bmh->bnh', onehot, sums)
    pooled = jnp.einsum('bnm,bnh->bmh', onehot, x * (score / denom))
    out = pooled @ params['wh'].astype(f32) + params['bh'][0]
    lens = (pos_np.max(axis=1) + 1).tolist()
    return [out[b, :lens[b]] for b in range(bsz)]


if __name__ == "__main__":
    cfg = dict(vocab_size=50, output_size=16, hidden_size=32, num_layers=2,
               num_heads=4, head_dim=8, pos_base=10000.0, dropout=0.0,
               mlp_intermediate_size=64, parametrized_head=False)
    key = jax.random.PRNGKey(0)
    params = init_params(key, cfg)

    bsz, b_n = 2, 8
    tok_key = jax.random.fold_in(key, 123)
    tokens = jax.random.randint(tok_key, (bsz, b_n), 0, cfg['vocab_size'], dtype=jnp.int32)
    positions = jnp.array([[0, 0, 1, 1, 2, 2, 3, 3],
                           [0, 1, 1, 2, 2, 3, 3, 3]], dtype=jnp.int32)
    lengths = jnp.array([8, 8], dtype=jnp.int32)

    result = kelso_predictor_forward(tokens, positions, lengths, params, cfg)
    result = [jax.block_until_ready(r) for r in result]

    ref = reference_forward(tokens, positions, lengths, params, cfg)
    for r_kern, r_ref in zip(result, ref):
        # bf16 weights/activations in the kernel path -> slightly wider tolerance
        np.testing.assert_allclose(np.asarray(r_kern), np.asarray(r_ref),
                                   rtol=3e-2, atol=3e-2)
    print("KERNEL_OK")
</pallas_src>

<mosaic_0001>
module attributes {stable_mosaic.version = 11 : i64} {
  func.func @decoder_layer_kernel(%arg0: i32, %arg1: memref<1x8x32xbf16, #tpu.memory_space<vmem>>, %arg2: memref<1x8x8xf32, #tpu.memory_space<vmem>>, %arg3: memref<1x8x8xf32, #tpu.memory_space<vmem>>, %arg4: memref<1x8x1xi32, #tpu.memory_space<vmem>>, %arg5: memref<1x1x8xi32, #tpu.memory_space<vmem>>, %arg6: memref<32x32xbf16, #tpu.memory_space<vmem>>, %arg7: memref<32x32xbf16, #tpu.memory_space<vmem>>, %arg8: memref<32x32xbf16, #tpu.memory_space<vmem>>, %arg9: memref<32x32xbf16, #tpu.memory_space<vmem>>, %arg10: memref<1x32xf32, #tpu.memory_space<vmem>>, %arg11: memref<1x32xf32, #tpu.memory_space<vmem>>, %arg12: memref<32x64xbf16, #tpu.memory_space<vmem>>, %arg13: memref<32x64xbf16, #tpu.memory_space<vmem>>, %arg14: memref<64x32xbf16, #tpu.memory_space<vmem>>, %arg15: memref<1x32xf32, #tpu.memory_space<vmem>>, %arg16: memref<1x32xf32, #tpu.memory_space<vmem>>, %arg17: memref<1x8x32xbf16, #tpu.memory_space<vmem>>) attributes {dimension_semantics = [#tpu.dimension_semantics<parallel>], iteration_bounds = array<i64: 2>, scalar_prefetch = 0 : i64, scratch_operands = 0 : i64, tpu.core_type = #tpu.core_type<tc>, window_params = [{transform_indices = @transform_0, window_bounds = array<i64: 1, 8, 32>}, {transform_indices = @transform_1, window_bounds = array<i64: 1, 8, 8>}, {transform_indices = @transform_2, window_bounds = array<i64: 1, 8, 8>}, {transform_indices = @transform_3, window_bounds = array<i64: 1, 8, 1>}, {transform_indices = @transform_4, window_bounds = array<i64: 1, 1, 8>}, {pipeline_mode = #tpu.pipeline_mode<synchronous>, transform_indices = @transform_5, window_bounds = array<i64: 32, 32>}, {pipeline_mode = #tpu.pipeline_mode<synchronous>, transform_indices = @transform_6, window_bounds = array<i64: 32, 32>}, {pipeline_mode = #tpu.pipeline_mode<synchronous>, transform_indices = @transform_7, window_bounds = array<i64: 32, 32>}, {pipeline_mode = #tpu.pipeline_mode<synchronous>, transform_indices = @transform_8, window_bounds = array<i64: 32, 32>}, {pipeline_mode = #tpu.pipeline_mode<synchronous>, transform_indices = @transform_9, window_bounds = array<i64: 1, 32>}, {pipeline_mode = #tpu.pipeline_mode<synchronous>, transform_indices = @transform_10, window_bounds = array<i64: 1, 32>}, {pipeline_mode = #tpu.pipeline_mode<synchronous>, transform_indices = @transform_11, window_bounds = array<i64: 32, 64>}, {pipeline_mode = #tpu.pipeline_mode<synchronous>, transform_indices = @transform_12, window_bounds = array<i64: 32, 64>}, {pipeline_mode = #tpu.pipeline_mode<synchronous>, transform_indices = @transform_13, window_bounds = array<i64: 64, 32>}, {pipeline_mode = #tpu.pipeline_mode<synchronous>, transform_indices = @transform_14, window_bounds = array<i64: 1, 32>}, {pipeline_mode = #tpu.pipeline_mode<synchronous>, transform_indices = @transform_15, window_bounds = array<i64: 1, 32>}, {transform_indices = @transform_16, window_bounds = array<i64: 1, 8, 32>}]} {
    %c0 = arith.constant 0 : index
    %c0_0 = arith.constant 0 : index
    %c0_1 = arith.constant 0 : index
    %0 = vector.load %arg1[%c0, %c0_0, %c0_1] : memref<1x8x32xbf16, #tpu.memory_space<vmem>>, vector<1x8x32xbf16>
    %1 = vector.shape_cast %0 : vector<1x8x32xbf16> to vector<8x32xbf16>
    %c0_2 = arith.constant 0 : index
    %c0_3 = arith.constant 0 : index
    %c0_4 = arith.constant 0 : index
    %2 = vector.load %arg2[%c0_2, %c0_3, %c0_4] : memref<1x8x8xf32, #tpu.memory_space<vmem>>, vector<1x8x8xf32>
    %3 = vector.shape_cast %2 : vector<1x8x8xf32> to vector<8x8xf32>
    %c0_5 = arith.constant 0 : index
    %c0_6 = arith.constant 0 : index
    %c0_7 = arith.constant 0 : index
    %4 = vector.load %arg3[%c0_5, %c0_6, %c0_7] : memref<1x8x8xf32, #tpu.memory_space<vmem>>, vector<1x8x8xf32>
    %5 = vector.shape_cast %4 : vector<1x8x8xf32> to vector<8x8xf32>
    %c0_8 = arith.constant 0 : index
    %c0_9 = arith.constant 0 : index
    %c0_10 = arith.constant 0 : index
    %6 = vector.load %arg4[%c0_8, %c0_9, %c0_10] : memref<1x8x1xi32, #tpu.memory_space<vmem>>, vector<1x8x1xi32>
    %7 = vector.shape_cast %6 : vector<1x8x1xi32> to vector<8x1xi32>
    %c0_11 = arith.constant 0 : index
    %c0_12 = arith.constant 0 : index
    %c0_13 = arith.constant 0 : index
    %8 = vector.load %arg5[%c0_11, %c0_12, %c0_13] : memref<1x1x8xi32, #tpu.memory_space<vmem>>, vector<1x1x8xi32>
    %9 = vector.shape_cast %8 : vector<1x1x8xi32> to vector<1x8xi32>
    %10 = vector.broadcast %7 : vector<8x1xi32> to vector<8x8xi32>
    %11 = vector.broadcast %9 : vector<1x8xi32> to vector<8x8xi32>
    %12 = arith.cmpi slt, %10, %11 : vector<8x8xi32>
    %cst = arith.constant -3.40282347E+38 : f32
    %cst_14 = arith.constant 0.000000e+00 : f32
    %13 = vector.broadcast %cst : f32 to vector<8x8xf32>
    %14 = vector.broadcast %cst_14 : f32 to vector<8x8xf32>
    %15 = arith.select %12, %13, %14 : vector<8x8xi1>, vector<8x8xf32>
    %c0_15 = arith.constant 0 : index
    %c0_16 = arith.constant 0 : index
    %16 = vector.load %arg6[%c0_15, %c0_16] : memref<32x32xbf16, #tpu.memory_space<vmem>>, vector<32x32xbf16>
    %cst_17 = arith.constant dense<0.000000e+00> : vector<8x32xf32>
    %17 = tpu.matmul %1, %16, %cst_17 {dimension_numbers = #tpu.dot_dimension_numbers<[1], [0], [0], [1], [0, 0, 1, 1], [], []>} : vector<8x32xbf16>, vector<32x32xbf16>, vector<8x32xf32> -> vector<8x32xf32>
    %cst_18 = arith.constant 0.353553385 : f32
    %18 = vector.broadcast %cst_18 : f32 to vector<8x32xf32>
    %19 = arith.mulf %17, %18 : vector<8x32xf32>
    %c0_19 = arith.constant 0 : index
    %c0_20 = arith.constant 0 : index
    %20 = vector.load %arg7[%c0_19, %c0_20] : memref<32x32xbf16, #tpu.memory_space<vmem>>, vector<32x32xbf16>
    %cst_21 = arith.constant dense<0.000000e+00> : vector<8x32xf32>
    %21 = tpu.matmul %1, %20, %cst_21 {dimension_numbers = #tpu.dot_dimension_numbers<[1], [0], [0], [1], [0, 0, 1, 1], [], []>} : vector<8x32xbf16>, vector<32x32xbf16>, vector<8x32xf32> -> vector<8x32xf32>
    %c0_22 = arith.constant 0 : index
    %c0_23 = arith.constant 0 : index
    %22 = vector.load %arg8[%c0_22, %c0_23] : memref<32x32xbf16, #tpu.memory_space<vmem>>, vector<32x32xbf16>
    %cst_24 = arith.constant dense<0.000000e+00> : vector<8x32xf32>
    %23 = tpu.matmul %1, %22, %cst_24 {dimension_numbers = #tpu.dot_dimension_numbers<[1], [0], [0], [1], [0, 0, 1, 1], [], []>} : vector<8x32xbf16>, vector<32x32xbf16>, vector<8x32xf32> -> vector<8x32xf32>
    %cst_25 = arith.constant 0.000000e+00 : f32
    %24 = vector.broadcast %cst_25 : f32 to vector<8x32xf32>
    %25 = vector.extract_strided_slice %19 {offsets = [0, 0], sizes = [8, 8], strides = [1, 1]} : vector<8x32xf32> to vector<8x8xf32>
    %26 = arith.mulf %25, %3 : vector<8x8xf32>
    %27 = vector.extract_strided_slice %25 {offsets = [0, 4], sizes = [8, 4], strides = [1, 1]} : vector<8x8xf32> to vector<8x4xf32>
    %28 = vector.extract_strided_slice %25 {offsets = [0, 0], sizes = [8, 4], strides = [1, 1]} : vector<8x8xf32> to vector<8x4xf32>
    %29 = tpu.concatenate %27, %28 in 1 : vector<8x4xf32>, vector<8x4xf32> -> vector<8x8xf32>
    %30 = arith.mulf %29, %5 : vector<8x8xf32>
    %31 = arith.addf %26, %30 : vector<8x8xf32>
    %32 = vector.extract_strided_slice %21 {offsets = [0, 0], sizes = [8, 8], strides = [1, 1]} : vector<8x32xf32> to vector<8x8xf32>
    %33 = arith.mulf %32, %3 : vector<8x8xf32>
    %34 = vector.extract_strided_slice %32 {offsets = [0, 4], sizes = [8, 4], strides = [1, 1]} : vector<8x8xf32> to vector<8x4xf32>
    %35 = vector.extract_strided_slice %32 {offsets = [0, 0], sizes = [8, 4], strides = [1, 1]} : vector<8x8xf32> to vector<8x4xf32>
    %36 = tpu.concatenate %34, %35 in 1 : vector<8x4xf32>, vector<8x4xf32> -> vector<8x8xf32>
    %37 = arith.mulf %36, %5 : vector<8x8xf32>
    %38 = arith.addf %33, %37 : vector<8x8xf32>
    %cst_26 = arith.constant dense<0.000000e+00> : vector<8x8xf32>
    %39 = tpu.matmul %31, %38, %cst_26 {dimension_numbers = #tpu.dot_dimension_numbers<[1], [1], [0], [0], [0, 0, 1, 0], [], []>} : vector<8x8xf32>, vector<8x8xf32>, vector<8x8xf32> -> vector<8x8xf32>
    %40 = arith.addf %39, %15 : vector<8x8xf32>
    %cst_27 = arith.constant dense<0xFF800000> : vector<8xf32>
    %41 = vector.multi_reduction <maximumf>, %40, %cst_27 [1] : vector<8x8xf32> to vector<8xf32>
    %42 = vector.shape_cast %41 : vector<8xf32> to vector<8x1xf32>
    %43 = vector.broadcast %42 : vector<8x1xf32> to vector<8x8xf32>
    %44 = arith.subf %40, %43 : vector<8x8xf32>
    %45 = math.exp %44 : vector<8x8xf32>
    %cst_28 = arith.constant dense<0.000000e+00> : vector<8xf32>
    %46 = vector.multi_reduction <add>, %45, %cst_28 [1] : vector<8x8xf32> to vector<8xf32>
    %47 = vector.shape_cast %46 : vector<8xf32> to vector<8x1xf32>
    %48 = tpu.reciprocal %47 {approx = true} : vector<8x1xf32> -> vector<8x1xf32>
    %49 = vector.broadcast %48 : vector<8x1xf32> to vector<8x8xf32>
    %50 = arith.mulf %45, %49 : vector<8x8xf32>
    %51 = arith.truncf %50 : vector<8x8xf32> to vector<8x8xbf16>
    %52 = vector.extract_strided_slice %23 {offsets = [0, 0], sizes = [8, 8], strides = [1, 1]} : vector<8x32xf32> to vector<8x8xf32>
    %53 = arith.truncf %52 : vector<8x8xf32> to vector<8x8xbf16>
    %cst_29 = arith.constant dense<0.000000e+00> : vector<8x8xf32>
    %54 = tpu.matmul %51, %53, %cst_29 {dimension_numbers = #tpu.dot_dimension_numbers<[1], [0], [0], [1], [0, 0, 1, 1], [], []>} : vector<8x8xbf16>, vector<8x8xbf16>, vector<8x8xf32> -> vector<8x8xf32>
    %55 = arith.truncf %54 : vector<8x8xf32> to vector<8x8xbf16>
    %c0_30 = arith.constant 0 : index
    %c0_31 = arith.constant 0 : index
    %56 = vector.load %arg9[%c0_30, %c0_31] : memref<32x32xbf16, #tpu.memory_space<vmem>>, vector<8x32xbf16>
    %cst_32 = arith.constant dense<0.000000e+00> : vector<8x32xf32>
    %57 = tpu.matmul %55, %56, %cst_32 {dimension_numbers = #tpu.dot_dimension_numbers<[1], [0], [0], [1], [0, 0, 1, 1], [], []>} : vector<8x8xbf16>, vector<8x32xbf16>, vector<8x32xf32> -> vector<8x32xf32>
    %58 = arith.addf %24, %57 : vector<8x32xf32>
    %59 = vector.extract_strided_slice %19 {offsets = [0, 8], sizes = [8, 8], strides = [1, 1]} : vector<8x32xf32> to vector<8x8xf32>
    %60 = arith.mulf %59, %3 : vector<8x8xf32>
    %61 = vector.extract_strided_slice %59 {offsets = [0, 4], sizes = [8, 4], strides = [1, 1]} : vector<8x8xf32> to vector<8x4xf32>
    %62 = vector.extract_strided_slice %59 {offsets = [0, 0], sizes = [8, 4], strides = [1, 1]} : vector<8x8xf32> to vector<8x4xf32>
    %63 = tpu.concatenate %61, %62 in 1 : vector<8x4xf32>, vector<8x4xf32> -> vector<8x8xf32>
    %64 = arith.mulf %63, %5 : vector<8x8xf32>
    %65 = arith.addf %60, %64 : vector<8x8xf32>
    %66 = vector.extract_strided_slice %21 {offsets = [0, 8], sizes = [8, 8], strides = [1, 1]} : vector<8x32xf32> to vector<8x8xf32>
    %67 = arith.mulf %66, %3 : vector<8x8xf32>
    %68 = vector.extract_strided_slice %66 {offsets = [0, 4], sizes = [8, 4], strides = [1, 1]} : vector<8x8xf32> to vector<8x4xf32>
    %69 = vector.extract_strided_slice %66 {offsets = [0, 0], sizes = [8, 4], strides = [1, 1]} : vector<8x8xf32> to vector<8x4xf32>
    %70 = tpu.concatenate %68, %69 in 1 : vector<8x4xf32>, vector<8x4xf32> -> vector<8x8xf32>
    %71 = arith.mulf %70, %5 : vector<8x8xf32>
    %72 = arith.addf %67, %71 : vector<8x8xf32>
    %cst_33 = arith.constant dense<0.000000e+00> : vector<8x8xf32>
    %73 = tpu.matmul %65, %72, %cst_33 {dimension_numbers = #tpu.dot_dimension_numbers<[1], [1], [0], [0], [0, 0, 1, 0], [], []>} : vector<8x8xf32>, vector<8x8xf32>, vector<8x8xf32> -> vector<8x8xf32>
    %74 = arith.addf %73, %15 : vector<8x8xf32>
    %cst_34 = arith.constant dense<0xFF800000> : vector<8xf32>
    %75 = vector.multi_reduction <maximumf>, %74, %cst_34 [1] : vector<8x8xf32> to vector<8xf32>
    %76 = vector.shape_cast %75 : vector<8xf32> to vector<8x1xf32>
    %77 = vector.broadcast %76 : vector<8x1xf32> to vector<8x8xf32>
    %78 = arith.subf %74, %77 : vector<8x8xf32>
    %79 = math.exp %78 : vector<8x8xf32>
    %cst_35 = arith.constant dense<0.000000e+00> : vector<8xf32>
    %80 = vector.multi_reduction <add>, %79, %cst_35 [1] : vector<8x8xf32> to vector<8xf32>
    %81 = vector.shape_cast %80 : vector<8xf32> to vector<8x1xf32>
    %82 = tpu.reciprocal %81 {approx = true} : vector<8x1xf32> -> vector<8x1xf32>
    %83 = vector.broadcast %82 : vector<8x1xf32> to vector<8x8xf32>
    %84 = arith.mulf %79, %83 : vector<8x8xf32>
    %85 = arith.truncf %84 : vector<8x8xf32> to vector<8x8xbf16>
    %86 = vector.extract_strided_slice %23 {offsets = [0, 8], sizes = [8, 8], strides = [1, 1]} : vector<8x32xf32> to vector<8x8xf32>
    %87 = arith.truncf %86 : vector<8x8xf32> to vector<8x8xbf16>
    %cst_36 = arith.constant dense<0.000000e+00> : vector<8x8xf32>
    %88 = tpu.matmul %85, %87, %cst_36 {dimension_numbers = #tpu.dot_dimension_numbers<[1], [0], [0], [1], [0, 0, 1, 1], [], []>} : vector<8x8xbf16>, vector<8x8xbf16>, vector<8x8xf32> -> vector<8x8xf32>
    %89 = arith.truncf %88 : vector<8x8xf32> to vector<8x8xbf16>
    %c8 = arith.constant 8 : index
    %c0_37 = arith.constant 0 : index
    %90 = vector.load %arg9[%c8, %c0_37] : memref<32x32xbf16, #tpu.memory_space<vmem>>, vector<8x32xbf16>
    %cst_38 = arith.constant dense<0.000000e+00> : vector<8x32xf32>
    %91 = tpu.matmul %89, %90, %cst_38 {dimension_numbers = #tpu.dot_dimension_numbers<[1], [0], [0], [1], [0, 0, 1, 1], [], []>} : vector<8x8xbf16>, vector<8x32xbf16>, vector<8x32xf32> -> vector<8x32xf32>
    %92 = arith.addf %58, %91 : vector<8x32xf32>
    %93 = vector.extract_strided_slice %19 {offsets = [0, 16], sizes = [8, 8], strides = [1, 1]} : vector<8x32xf32> to vector<8x8xf32>
    %94 = arith.mulf %93, %3 : vector<8x8xf32>
    %95 = vector.extract_strided_slice %93 {offsets = [0, 4], sizes = [8, 4], strides = [1, 1]} : vector<8x8xf32> to vector<8x4xf32>
    %96 = vector.extract_strided_slice %93 {offsets = [0, 0], sizes = [8, 4], strides = [1, 1]} : vector<8x8xf32> to vector<8x4xf32>
    %97 = tpu.concatenate %95, %96 in 1 : vector<8x4xf32>, vector<8x4xf32> -> vector<8x8xf32>
    %98 = arith.mulf %97, %5 : vector<8x8xf32>
    %99 = arith.addf %94, %98 : vector<8x8xf32>
    %100 = vector.extract_strided_slice %21 {offsets = [0, 16], sizes = [8, 8], strides = [1, 1]} : vector<8x32xf32> to vector<8x8xf32>
    %101 = arith.mulf %100, %3 : vector<8x8xf32>
    %102 = vector.extract_strided_slice %100 {offsets = [0, 4], sizes = [8, 4], strides = [1, 1]} : vector<8x8xf32> to vector<8x4xf32>
    %103 = vector.extract_strided_slice %100 {offsets = [0, 0], sizes = [8, 4], strides = [1, 1]} : vector<8x8xf32> to vector<8x4xf32>
    %104 = tpu.concatenate %102, %103 in 1 : vector<8x4xf32>, vector<8x4xf32> -> vector<8x8xf32>
    %105 = arith.mulf %104, %5 : vector<8x8xf32>
    %106 = arith.addf %101, %105 : vector<8x8xf32>
    %cst_39 = arith.constant dense<0.000000e+00> : vector<8x8xf32>
    %107 = tpu.matmul %99, %106, %cst_39 {dimension_numbers = #tpu.dot_dimension_numbers<[1], [1], [0], [0], [0, 0, 1, 0], [], []>} : vector<8x8xf32>, vector<8x8xf32>, vector<8x8xf32> -> vector<8x8xf32>
    %108 = arith.addf %107, %15 : vector<8x8xf32>
    %cst_40 = arith.constant dense<0xFF800000> : vector<8xf32>
    %109 = vector.multi_reduction <maximumf>, %108, %cst_40 [1] : vector<8x8xf32> to vector<8xf32>
    %110 = vector.shape_cast %109 : vector<8xf32> to vector<8x1xf32>
    %111 = vector.broadcast %110 : vector<8x1xf32> to vector<8x8xf32>
    %112 = arith.subf %108, %111 : vector<8x8xf32>
    %113 = math.exp %112 : vector<8x8xf32>
    %cst_41 = arith.constant dense<0.000000e+00> : vector<8xf32>
    %114 = vector.multi_reduction <add>, %113, %cst_41 [1] : vector<8x8xf32> to vector<8xf32>
    %115 = vector.shape_cast %114 : vector<8xf32> to vector<8x1xf32>
    %116 = tpu.reciprocal %115 {approx = true} : vector<8x1xf32> -> vector<8x1xf32>
    %117 = vector.broadcast %116 : vector<8x1xf32> to vector<8x8xf32>
    %118 = arith.mulf %113, %117 : vector<8x8xf32>
    %119 = arith.truncf %118 : vector<8x8xf32> to vector<8x8xbf16>
    %120 = vector.extract_strided_slice %23 {offsets = [0, 16], sizes = [8, 8], strides = [1, 1]} : vector<8x32xf32> to vector<8x8xf32>
    %121 = arith.truncf %120 : vector<8x8xf32> to vector<8x8xbf16>
    %cst_42 = arith.constant dense<0.000000e+00> : vector<8x8xf32>
    %122 = tpu.matmul %119, %121, %cst_42 {dimension_numbers = #tpu.dot_dimension_numbers<[1], [0], [0], [1], [0, 0, 1, 1], [], []>} : vector<8x8xbf16>, vector<8x8xbf16>, vector<8x8xf32> -> vector<8x8xf32>
    %123 = arith.truncf %122 : vector<8x8xf32> to vector<8x8xbf16>
    %c16 = arith.constant 16 : index
    %c0_43 = arith.constant 0 : index
    %124 = vector.load %arg9[%c16, %c0_43] : memref<32x32xbf16, #tpu.memory_space<vmem>>, vector<8x32xbf16>
    %cst_44 = arith.constant dense<0.000000e+00> : vector<8x32xf32>
    %125 = tpu.matmul %123, %124, %cst_44 {dimension_numbers = #tpu.dot_dimension_numbers<[1], [0], [0], [1], [0, 0, 1, 1], [], []>} : vector<8x8xbf16>, vector<8x32xbf16>, vector<8x32xf32> -> vector<8x32xf32>
    %126 = arith.addf %92, %125 : vector<8x32xf32>
    %127 = vector.extract_strided_slice %19 {offsets = [0, 24], sizes = [8, 8], strides = [1, 1]} : vector<8x32xf32> to vector<8x8xf32>
    %128 = arith.mulf %127, %3 : vector<8x8xf32>
    %129 = vector.extract_strided_slice %127 {offsets = [0, 4], sizes = [8, 4], strides = [1, 1]} : vector<8x8xf32> to vector<8x4xf32>
    %130 = vector.extract_strided_slice %127 {offsets = [0, 0], sizes = [8, 4], strides = [1, 1]} : vector<8x8xf32> to vector<8x4xf32>
    %131 = tpu.concatenate %129, %130 in 1 : vector<8x4xf32>, vector<8x4xf32> -> vector<8x8xf32>
    %132 = arith.mulf %131, %5 : vector<8x8xf32>
    %133 = arith.addf %128, %132 : vector<8x8xf32>
    %134 = vector.extract_strided_slice %21 {offsets = [0, 24], sizes = [8, 8], strides = [1, 1]} : vector<8x32xf32> to vector<8x8xf32>
    %135 = arith.mulf %134, %3 : vector<8x8xf32>
    %136 = vector.extract_strided_slice %134 {offsets = [0, 4], sizes = [8, 4], strides = [1, 1]} : vector<8x8xf32> to vector<8x4xf32>
    %137 = vector.extract_strided_slice %134 {offsets = [0, 0], sizes = [8, 4], strides = [1, 1]} : vector<8x8xf32> to vector<8x4xf32>
    %138 = tpu.concatenate %136, %137 in 1 : vector<8x4xf32>, vector<8x4xf32> -> vector<8x8xf32>
    %139 = arith.mulf %138, %5 : vector<8x8xf32>
    %140 = arith.addf %135, %139 : vector<8x8xf32>
    %cst_45 = arith.constant dense<0.000000e+00> : vector<8x8xf32>
    %141 = tpu.matmul %133, %140, %cst_45 {dimension_numbers = #tpu.dot_dimension_numbers<[1], [1], [0], [0], [0, 0, 1, 0], [], []>} : vector<8x8xf32>, vector<8x8xf32>, vector<8x8xf32> -> vector<8x8xf32>
    %142 = arith.addf %141, %15 : vector<8x8xf32>
    %cst_46 = arith.constant dense<0xFF800000> : vector<8xf32>
    %143 = vector.multi_reduction <maximumf>, %142, %cst_46 [1] : vector<8x8xf32> to vector<8xf32>
    %144 = vector.shape_cast %143 : vector<8xf32> to vector<8x1xf32>
    %145 = vector.broadcast %144 : vector<8x1xf32> to vector<8x8xf32>
    %146 = arith.subf %142, %145 : vector<8x8xf32>
    %147 = math.exp %146 : vector<8x8xf32>
    %cst_47 = arith.constant dense<0.000000e+00> : vector<8xf32>
    %148 = vector.multi_reduction <add>, %147, %cst_47 [1] : vector<8x8xf32> to vector<8xf32>
    %149 = vector.shape_cast %148 : vector<8xf32> to vector<8x1xf32>
    %150 = tpu.reciprocal %149 {approx = true} : vector<8x1xf32> -> vector<8x1xf32>
    %151 = vector.broadcast %150 : vector<8x1xf32> to vector<8x8xf32>
    %152 = arith.mulf %147, %151 : vector<8x8xf32>
    %153 = arith.truncf %152 : vector<8x8xf32> to vector<8x8xbf16>
    %154 = vector.extract_strided_slice %23 {offsets = [0, 24], sizes = [8, 8], strides = [1, 1]} : vector<8x32xf32> to vector<8x8xf32>
    %155 = arith.truncf %154 : vector<8x8xf32> to vector<8x8xbf16>
    %cst_48 = arith.constant dense<0.000000e+00> : vector<8x8xf32>
    %156 = tpu.matmul %153, %155, %cst_48 {dimension_numbers = #tpu.dot_dimension_numbers<[1], [0], [0], [1], [0, 0, 1, 1], [], []>} : vector<8x8xbf16>, vector<8x8xbf16>, vector<8x8xf32> -> vector<8x8xf32>
    %157 = arith.truncf %156 : vector<8x8xf32> to vector<8x8xbf16>
    %c24 = arith.constant 24 : index
    %c0_49 = arith.constant 0 : index
    %158 = vector.load %arg9[%c24, %c0_49] : memref<32x32xbf16, #tpu.memory_space<vmem>>, vector<8x32xbf16>
    %cst_50 = arith.constant dense<0.000000e+00> : vector<8x32xf32>
    %159 = tpu.matmul %157, %158, %cst_50 {dimension_numbers = #tpu.dot_dimension_numbers<[1], [0], [0], [1], [0, 0, 1, 1], [], []>} : vector<8x8xbf16>, vector<8x32xbf16>, vector<8x32xf32> -> vector<8x32xf32>
    %160 = arith.addf %126, %159 : vector<8x32xf32>
    %161 = arith.extf %1 : vector<8x32xbf16> to vector<8x32xf32>
    %162 = arith.addf %161, %160 : vector<8x32xf32>
    %c0_51 = arith.constant 0 : index
    %c0_52 = arith.constant 0 : index
    %163 = vector.load %arg10[%c0_51, %c0_52] : memref<1x32xf32, #tpu.memory_space<vmem>>, vector<1x32xf32>
    %164 = vector.shape_cast %163 : vector<1x32xf32> to vector<32xf32>
    %c0_53 = arith.constant 0 : index
    %c0_54 = arith.constant 0 : index
    %165 = vector.load %arg11[%c0_53, %c0_54] : memref<1x32xf32, #tpu.memory_space<vmem>>, vector<1x32xf32>
    %166 = vector.shape_cast %165 : vector<1x32xf32> to vector<32xf32>
    %cst_55 = arith.constant dense<0.000000e+00> : vector<8xf32>
    %167 = vector.multi_reduction <add>, %162, %cst_55 [1] : vector<8x32xf32> to vector<8xf32>
    %168 = vector.shape_cast %167 : vector<8xf32> to vector<8x1xf32>
    %cst_56 = arith.constant 3.200000e+01 : f32
    %169 = vector.broadcast %cst_56 : f32 to vector<8x1xf32>
    %170 = arith.divf %168, %169 : vector<8x1xf32>
    %171 = vector.broadcast %170 : vector<8x1xf32> to vector<8x32xf32>
    %172 = arith.subf %162, %171 : vector<8x32xf32>
    %173 = arith.mulf %172, %172 : vector<8x32xf32>
    %cst_57 = arith.constant dense<0.000000e+00> : vector<8xf32>
    %174 = vector.multi_reduction <add>, %173, %cst_57 [1] : vector<8x32xf32> to vector<8xf32>
    %175 = vector.shape_cast %174 : vector<8xf32> to vector<8x1xf32>
    %cst_58 = arith.constant 3.200000e+01 : f32
    %176 = vector.broadcast %cst_58 : f32 to vector<8x1xf32>
    %177 = arith.divf %175, %176 : vector<8x1xf32>
    %178 = vector.broadcast %170 : vector<8x1xf32> to vector<8x32xf32>
    %179 = arith.subf %162, %178 : vector<8x32xf32>
    %cst_59 = arith.constant 9.99999974E-6 : f32
    %180 = vector.broadcast %cst_59 : f32 to vector<8x1xf32>
    %181 = arith.addf %177, %180 : vector<8x1xf32>
    %182 = math.rsqrt %181 : vector<8x1xf32>
    %183 = vector.broadcast %182 : vector<8x1xf32> to vector<8x32xf32>
    %184 = arith.mulf %179, %183 : vector<8x32xf32>
    %185 = vector.shape_cast %164 : vector<32xf32> to vector<1x32xf32>
    %186 = vector.broadcast %185 : vector<1x32xf32> to vector<8x32xf32>
    %187 = arith.mulf %184, %186 : vector<8x32xf32>
    %188 = vector.shape_cast %166 : vector<32xf32> to vector<1x32xf32>
    %189 = vector.broadcast %188 : vector<1x32xf32> to vector<8x32xf32>
    %190 = arith.addf %187, %189 : vector<8x32xf32>
    %191 = arith.truncf %190 : vector<8x32xf32> to vector<8x32xbf16>
    %c0_60 = arith.constant 0 : index
    %c0_61 = arith.constant 0 : index
    %192 = vector.load %arg12[%c0_60, %c0_61] : memref<32x64xbf16, #tpu.memory_space<vmem>>, vector<32x64xbf16>
    %cst_62 = arith.constant dense<0.000000e+00> : vector<8x64xf32>
    %193 = tpu.matmul %191, %192, %cst_62 {dimension_numbers = #tpu.dot_dimension_numbers<[1], [0], [0], [1], [0, 0, 1, 1], [], []>} : vector<8x32xbf16>, vector<32x64xbf16>, vector<8x64xf32> -> vector<8x64xf32>
    %c0_63 = arith.constant 0 : index
    %c0_64 = arith.constant 0 : index
    %194 = vector.load %arg13[%c0_63, %c0_64] : memref<32x64xbf16, #tpu.memory_space<vmem>>, vector<32x64xbf16>
    %cst_65 = arith.constant dense<0.000000e+00> : vector<8x64xf32>
    %195 = tpu.matmul %191, %194, %cst_65 {dimension_numbers = #tpu.dot_dimension_numbers<[1], [0], [0], [1], [0, 0, 1, 1], [], []>} : vector<8x32xbf16>, vector<32x64xbf16>, vector<8x64xf32> -> vector<8x64xf32>
    %cst_66 = arith.constant 0.000000e+00 : f32
    %196 = vector.broadcast %cst_66 : f32 to vector<8x64xf32>
    %197 = arith.subf %196, %193 : vector<8x64xf32>
    %198 = math.exp %197 : vector<8x64xf32>
    %cst_67 = arith.constant 1.000000e+00 : f32
    %199 = vector.broadcast %cst_67 : f32 to vector<8x64xf32>
    %200 = arith.addf %199, %198 : vector<8x64xf32>
    %201 = tpu.reciprocal %200 {approx = true} : vector<8x64xf32> -> vector<8x64xf32>
    %202 = arith.mulf %193, %201 : vector<8x64xf32>
    %203 = arith.mulf %202, %195 : vector<8x64xf32>
    %204 = arith.truncf %203 : vector<8x64xf32> to vector<8x64xbf16>
    %c0_68 = arith.constant 0 : index
    %c0_69 = arith.constant 0 : index
    %205 = vector.load %arg14[%c0_68, %c0_69] : memref<64x32xbf16, #tpu.memory_space<vmem>>, vector<64x32xbf16>
    %cst_70 = arith.constant dense<0.000000e+00> : vector<8x32xf32>
    %206 = tpu.matmul %204, %205, %cst_70 {dimension_numbers = #tpu.dot_dimension_numbers<[1], [0], [0], [1], [0, 0, 1, 1], [], []>} : vector<8x64xbf16>, vector<64x32xbf16>, vector<8x32xf32> -> vector<8x32xf32>
    %207 = arith.addf %162, %206 : vector<8x32xf32>
    %c0_71 = arith.constant 0 : index
    %c0_72 = arith.constant 0 : index
    %208 = vector.load %arg15[%c0_71, %c0_72] : memref<1x32xf32, #tpu.memory_space<vmem>>, vector<1x32xf32>
    %209 = vector.shape_cast %208 : vector<1x32xf32> to vector<32xf32>
    %c0_73 = arith.constant 0 : index
    %c0_74 = arith.constant 0 : index
    %210 = vector.load %arg16[%c0_73, %c0_74] : memref<1x32xf32, #tpu.memory_space<vmem>>, vector<1x32xf32>
    %211 = vector.shape_cast %210 : vector<1x32xf32> to vector<32xf32>
    %cst_75 = arith.constant dense<0.000000e+00> : vector<8xf32>
    %212 = vector.multi_reduction <add>, %207, %cst_75 [1] : vector<8x32xf32> to vector<8xf32>
    %213 = vector.shape_cast %212 : vector<8xf32> to vector<8x1xf32>
    %cst_76 = arith.constant 3.200000e+01 : f32
    %214 = vector.broadcast %cst_76 : f32 to vector<8x1xf32>
    %215 = arith.divf %213, %214 : vector<8x1xf32>
    %216 = vector.broadcast %215 : vector<8x1xf32> to vector<8x32xf32>
    %217 = arith.subf %207, %216 : vector<8x32xf32>
    %218 = arith.mulf %217, %217 : vector<8x32xf32>
    %cst_77 = arith.constant dense<0.000000e+00> : vector<8xf32>
    %219 = vector.multi_reduction <add>, %218, %cst_77 [1] : vector<8x32xf32> to vector<8xf32>
    %220 = vector.shape_cast %219 : vector<8xf32> to vector<8x1xf32>
    %cst_78 = arith.constant 3.200000e+01 : f32
    %221 = vector.broadcast %cst_78 : f32 to vector<8x1xf32>
    %222 = arith.divf %220, %221 : vector<8x1xf32>
    %223 = vector.broadcast %215 : vector<8x1xf32> to vector<8x32xf32>
    %224 = arith.subf %207, %223 : vector<8x32xf32>
    %cst_79 = arith.constant 9.99999974E-6 : f32
    %225 = vector.broadcast %cst_79 : f32 to vector<8x1xf32>
    %226 = arith.addf %222, %225 : vector<8x1xf32>
    %227 = math.rsqrt %226 : vector<8x1xf32>
    %228 = vector.broadcast %227 : vector<8x1xf32> to vector<8x32xf32>
    %229 = arith.mulf %224, %228 : vector<8x32xf32>
    %230 = vector.shape_cast %209 : vector<32xf32> to vector<1x32xf32>
    %231 = vector.broadcast %230 : vector<1x32xf32> to vector<8x32xf32>
    %232 = arith.mulf %229, %231 : vector<8x32xf32>
    %233 = vector.shape_cast %211 : vector<32xf32> to vector<1x32xf32>
    %234 = vector.broadcast %233 : vector<1x32xf32> to vector<8x32xf32>
    %235 = arith.addf %232, %234 : vector<8x32xf32>
    %236 = arith.truncf %235 : vector<8x32xf32> to vector<8x32xbf16>
    %c0_80 = arith.constant 0 : index
    %c0_81 = arith.constant 0 : index
    %c0_82 = arith.constant 0 : index
    %237 = vector.load %arg17[%c0_80, %c0_81, %c0_82] : memref<1x8x32xbf16, #tpu.memory_space<vmem>>, vector<1x8x32xbf16>
    %238 = vector.shape_cast %237 : vector<1x8x32xbf16> to vector<8x32xbf16>
    %239 = vector.shape_cast %236 : vector<8x32xbf16> to vector<1x8x32xbf16>
    tpu.vector_store %arg17[%c0_80, %c0_81, %c0_82], %239 {strides = array<i32>} : memref<1x8x32xbf16, #tpu.memory_space<vmem>>, vector<1x8x32xbf16>,
    return
  }
  func.func @transform_0(%arg0: i32) -> (i32, i32, i32) {
    %c0_i32 = arith.constant 0 : i32
    %c0_i32_0 = arith.constant 0 : i32
    %c0_i32_1 = arith.constant 0 : i32
    return %arg0, %c0_i32, %c0_i32_0 : i32, i32, i32
  }
  func.func @transform_1(%arg0: i32) -> (i32, i32, i32) {
    %c0_i32 = arith.constant 0 : i32
    %c0_i32_0 = arith.constant 0 : i32
    %c0_i32_1 = arith.constant 0 : i32
    return %arg0, %c0_i32, %c0_i32_0 : i32, i32, i32
  }
  func.func @transform_2(%arg0: i32) -> (i32, i32, i32) {
    %c0_i32 = arith.constant 0 : i32
    %c0_i32_0 = arith.constant 0 : i32
    %c0_i32_1 = arith.constant 0 : i32
    return %arg0, %c0_i32, %c0_i32_0 : i32, i32, i32
  }
  func.func @transform_3(%arg0: i32) -> (i32, i32, i32) {
    %c0_i32 = arith.constant 0 : i32
    %c0_i32_0 = arith.constant 0 : i32
    %c0_i32_1 = arith.constant 0 : i32
    return %arg0, %c0_i32, %c0_i32_0 : i32, i32, i32
  }
  func.func @transform_4(%arg0: i32) -> (i32, i32, i32) {
    %c0_i32 = arith.constant 0 : i32
    %c0_i32_0 = arith.constant 0 : i32
    %c0_i32_1 = arith.constant 0 : i32
    return %arg0, %c0_i32, %c0_i32_0 : i32, i32, i32
  }
  func.func @transform_5(%arg0: i32) -> (i32, i32) {
    %c0_i32 = arith.constant 0 : i32
    %c0_i32_0 = arith.constant 0 : i32
    %c0_i32_1 = arith.constant 0 : i32
    return %c0_i32, %c0_i32_0 : i32, i32
  }
  func.func @transform_6(%arg0: i32) -> (i32, i32) {
    %c0_i32 = arith.constant 0 : i32
    %c0_i32_0 = arith.constant 0 : i32
    %c0_i32_1 = arith.constant 0 : i32
    return %c0_i32, %c0_i32_0 : i32, i32
  }
  func.func @transform_7(%arg0: i32) -> (i32, i32) {
    %c0_i32 = arith.constant 0 : i32
    %c0_i32_0 = arith.constant 0 : i32
    %c0_i32_1 = arith.constant 0 : i32
    return %c0_i32, %c0_i32_0 : i32, i32
  }
  func.func @transform_8(%arg0: i32) -> (i32, i32) {
    %c0_i32 = arith.constant 0 : i32
    %c0_i32_0 = arith.constant 0 : i32
    %c0_i32_1 = arith.constant 0 : i32
    return %c0_i32, %c0_i32_0 : i32, i32
  }
  func.func @transform_9(%arg0: i32) -> (i32, i32) {
    %c0_i32 = arith.constant 0 : i32
    %c0_i32_0 = arith.constant 0 : i32
    %c0_i32_1 = arith.constant 0 : i32
    return %c0_i32, %c0_i32_0 : i32, i32
  }
  func.func @transform_10(%arg0: i32) -> (i32, i32) {
    %c0_i32 = arith.constant 0 : i32
    %c0_i32_0 = arith.constant 0 : i32
    %c0_i32_1 = arith.constant 0 : i32
    return %c0_i32, %c0_i32_0 : i32, i32
  }
  func.func @transform_11(%arg0: i32) -> (i32, i32) {
    %c0_i32 = arith.constant 0 : i32
    %c0_i32_0 = arith.constant 0 : i32
    %c0_i32_1 = arith.constant 0 : i32
    return %c0_i32, %c0_i32_0 : i32, i32
  }
  func.func @transform_12(%arg0: i32) -> (i32, i32) {
    %c0_i32 = arith.constant 0 : i32
    %c0_i32_0 = arith.constant 0 : i32
    %c0_i32_1 = arith.constant 0 : i32
    return %c0_i32, %c0_i32_0 : i32, i32
  }
  func.func @transform_13(%arg0: i32) -> (i32, i32) {
    %c0_i32 = arith.constant 0 : i32
    %c0_i32_0 = arith.constant 0 : i32
    %c0_i32_1 = arith.constant 0 : i32
    return %c0_i32, %c0_i32_0 : i32, i32
  }
  func.func @transform_14(%arg0: i32) -> (i32, i32) {
    %c0_i32 = arith.constant 0 : i32
    %c0_i32_0 = arith.constant 0 : i32
    %c0_i32_1 = arith.constant 0 : i32
    return %c0_i32, %c0_i32_0 : i32, i32
  }
  func.func @transform_15(%arg0: i32) -> (i32, i32) {
    %c0_i32 = arith.constant 0 : i32
    %c0_i32_0 = arith.constant 0 : i32
    %c0_i32_1 = arith.constant 0 : i32
    return %c0_i32, %c0_i32_0 : i32, i32
  }
  func.func @transform_16(%arg0: i32) -> (i32, i32, i32) {
    %c0_i32 = arith.constant 0 : i32
    %c0_i32_0 = arith.constant 0 : i32
    %c0_i32_1 = arith.constant 0 : i32
    return %arg0, %c0_i32, %c0_i32_0 : i32, i32, i32
  }
}

</mosaic_0001>

<bundles_post_ra>
// kernel: tpu_custom_call.1
= control target key start
LH: loop header
LB: loop body
LE: loop exit
PB: predicated region body
PF: predicated region fallthrough
CT: control target
= control target key end

     0   :  { %s3315_s0 = inlined_call_operand.hbm [shape: bf16[2,8,32], index: 0, kind: input, shape index: {}]   ;;  %s3316_s1 = inlined_call_operand.vmem [shape: f32[2,8,8], index: 1, kind: input, shape index: {}]   ;;  %s3317_s2 = inlined_call_operand.vmem [shape: f32[2,8,8], index: 2, kind: input, shape index: {}]   ;;  %s3318_s3 = inlined_call_operand.vmem [shape: s32[2,8,1], index: 3, kind: input, shape index: {}]   ;;  %s3319_s4 = inlined_call_operand.hbm [shape: s32[2,1,8], index: 4, kind: input, shape index: {}]   ;;  %s3320_s5 = inlined_call_operand.vmem [shape: bf16[32,32], index: 5, kind: input, shape index: {}]   ;;  %s3321_s6 = inlined_call_operand.vmem [shape: bf16[32,32], index: 6, kind: input, shape index: {}]   ;;  %s3322_s7 = inlined_call_operand.hbm [shape: bf16[32,32], index: 7, kind: input, shape index: {}]   ;;  %s3323_s8 = inlined_call_operand.vmem [shape: bf16[32,32], index: 8, kind: input, shape index: {}]   ;;  %s3324_s9 = inlined_call_operand.vmem [shape: f32[1,32], index: 9, kind: input, shape index: {}]   ;;  %s3325_s10 = inlined_call_operand.vmem [shape: f32[1,32], index: 10, kind: input, shape index: {}]   ;;  %s3326_s11 = inlined_call_operand.hbm [shape: bf16[32,64], index: 11, kind: input, shape index: {}]   ;;  %s3327_s12 = inlined_call_operand.hbm [shape: bf16[32,64], index: 12, kind: input, shape index: {}]   ;;  %s3328_s13 = inlined_call_operand.vmem [shape: bf16[64,32], index: 13, kind: input, shape index: {}]   ;;  %s3329_s14 = inlined_call_operand.vmem [shape: f32[1,32], index: 14, kind: input, shape index: {}]   ;;  %s3330_s15 = inlined_call_operand.vmem [shape: f32[1,32], index: 15, kind: input, shape index: {}]   ;;  %s3331_s16 = inlined_call_operand.hbm [shape: bf16[2,8,32], index: 16, kind: output, shape index: {}]  }
   0x1   :  { %3345 = sst [smem:[#allocation23_spill]] %s3315_s0 }
   0x2   :  { %3346 = sst [smem:[#allocation24_spill]] %s3322_s7 }
   0x3   :  { %3347 = sst [smem:[#allocation25_spill]] %s3326_s11 }
   0x4   :  { %3348 = sst [smem:[#allocation26_spill]] %s3327_s12 }
   0x5   :  { %3349 = sst [smem:[#allocation27_spill]] %s3330_s15 }
   0x6   :  { %3350 = sst [smem:[#allocation28_spill]] %s3331_s16 }
   0x7   :  { %21 = vsyncpa [#allocation3], 0 }
   0x8   :  { %23 = vsyncpa [#allocation3 + $0x1], 0 }
   0x9   :  { %24 = vsyncpa [#allocation6], 0 }
   0xa   :  { %26 = vsyncpa [#allocation6 + $0x1], 0 }
   0xb   :  { %27 = vsyncpa [#allocation9], 0 }
   0xc   :  { %28 = vsyncpa [#allocation4], 0 }
   0xd   :  { %30 = vsyncpa [#allocation4 + $0x1], 0  ;;  %s2821_s21 = smov 0   ;;  %s2823_s22 = smov 0  }
   0xe   :  { %s2825_s23 = smov 0   ;;  %s2827_s24 = smov 0  }
   0xf LB: > { %3351 = sst [smem:[#allocation17_spill]] %s2700_s21  ;;  %s2842_s25 = sadd.s32 4294967295, %s2712_s24   ;;  %s2712_s24 = sphi %s2827_s24, %s3383_s24   ;;  %s2708_s23 = sphi %s2825_s23, %s3385_s23   ;;  %s2704_s22 = sphi %s2823_s22, %s3387_s22   ;;  %s2700_s21 = sphi %s2821_s21, %s3386_s21  }
  0x10   : > { %3352 = sst [smem:[#allocation18_spill]] %s2708_s23  ;;  %s2137_s26 = sadd.s32 4294967294, %s2712_s24  }
  0x11   : > { %p56_p0 = scmp.ne.s32.totalorder %s2704_s22, %s2700_s21  ;;  %p3336_p1 = scmp.eq.s32.totalorder %s2842_s25, 0 }
  0x12   : > { %p421_p3 = scmp.eq.s32.totalorder %s2137_s26, 1  ;;  %p2138_p5 = scmp.ge.s32.totalorder %s2712_s24, 1 }
  0x13   : > { %p2851_p4 = por %p3336_p1, %p56_p0  ;;  %p428_p7 = scmp.lt.s32.totalorder %s2712_s24, 3 }
  0x14   : > { %p2856_p6 = por %p421_p3, %p56_p0  ;;  %s2714_s30 = smov [#allocation7]  }
  0x15   : > { %s3353_s27 = scalar_select %p2851_p4, 1, 0 }
  0x16   : > { %s3354_s28 = scalar_select %p2856_p6, 1, 0 }
  0x17   : > { %p2861_p8 = pnand %p2138_p5, %p428_p7  ;;  %s446_s0 = sshll.u32 %s2714_s30, 4  ;;  %s447_s0 = int_to_ptr.vmem [resolvable:$true] %s446_s0 }
  0x18   : > { %3355 = sst [smem:[#allocation19_spill]] %s3354_s28  ;;  %s2715_s18 = smov [#allocation8]  }
  0x19   : > { %s3356_s29 = scalar_select %p2861_p8, 1, 0 }
  0x1a   : > { %p2382_p9 = pneg %p2861_p8  ;;  %s468_s19 = sshll.u32 %s2715_s18, 4  ;;  %s469_s19 = int_to_ptr.vmem [resolvable:$true] %s468_s19 }
  0x1b   : > { %s2716_s20 = smov [#allocation10]   ;;  %s2513_s28 = scalar_lea.vmem %s447_s0, 256 }
  0x1c   : > { %p2870_p11 = pnand %p2382_p9, %p3336_p1  ;;  %s481_s26 = sshll.u32 %s2716_s20, 4  ;;  %s482_s26 = int_to_ptr.vmem [resolvable:$true] %s481_s26 }
  0x1d   : > { %p2514_p13 = scmp.ne.s32.totalorder %s447_s0, %s2513_s28  ;;  %p2521_p5 = scmp.lt.s32.totalorder %s447_s0, %s447_s0 }
  0x1e   : > { %p2504_p12 = pneg %p2870_p11  ;;  %p2522_p7 = scmp.lt.s32.totalorder %s2513_s28, %s2513_s28 }
  0x20   : > { %p2516_p0 = pnand %p2514_p13, %p2504_p12  ;;  %p2523_p9 = por %p2522_p7, %p2521_p5 }
  0x22   : > { %p2517_p3 = pneg %p2516_p0 }
  0x24   : > { %p2524_p10 = pnand %p2523_p9, %p2517_p3 }
  0x26   : > { %2527 = shalt.err (!%p2524_p10)
}
  0x27   : > { %s2717_s30 = smov 64   ;;  %s2718_s18 = smov 4  }
  0x28   : > { %s3358_s7 = sld [smem:[#allocation24_spill]]  ;;  %s2539_s16 = scalar_lea.vmem %s469_s19, 256 }
  0x29   : > { %p2540_p1 = scmp.ne.s32.totalorder %s469_s19, %s2539_s16  ;;  %p2547_p2 = scmp.lt.s32.totalorder %s469_s19, %s469_s19 }
  0x2a   : > { %p2548_p6 = scmp.lt.s32.totalorder %s2539_s16, %s2539_s16 }
  0x2b   : > { %p2542_p13 = pnand %p2540_p1, %p2504_p12 }
  0x2c   : > { %p2549_p5 = por %p2548_p6, %p2547_p2 }
  0x2d   : > { %p2543_p0 = pneg %p2542_p13 }
  0x2e   : > { %2385 = dma.hbm_to_vmem [thread:$0]  (!%p2870_p11), %s3358_s7, 256, %s447_s0, [#allocation6], %s2717_s30, %s2717_s30, %s2718_s18  }
  0x2f   : > { %p2550_p3 = pnand %p2549_p5, %p2543_p0 }
  0x31   : > { %2553 = shalt.err (!%p2550_p3)
}
  0x32   : > { %s3359_s11 = sld [smem:[#allocation25_spill]]  ;;  %s2565_s21 = scalar_lea.vmem %s482_s26, 256 }
  0x33   : > { %p2566_p10 = scmp.ne.s32.totalorder %s482_s26, %s2565_s21  ;;  %p2573_p9 = scmp.lt.s32.totalorder %s482_s26, %s482_s26 }
  0x34   : > { %p2574_p13 = scmp.lt.s32.totalorder %s2565_s21, %s2565_s21 }
  0x35   : > { %p2568_p7 = pnand %p2566_p10, %p2504_p12 }
  0x36   : > { %p2575_p4 = por %p2574_p13, %p2573_p9 }
  0x37   : > { %p2569_p1 = pneg %p2568_p7 }
  0x38   : > { %2388 = dma.hbm_to_vmem [thread:$0]  (!%p2870_p11), %s3359_s11, 256, %s469_s19, [#allocation9], %s2717_s30, %s2717_s30, %s2718_s18  }
  0x39   : > { %p2576_p2 = pnand %p2575_p4, %p2569_p1 }
  0x3b   : > { %2579 = shalt.err (!%p2576_p2)
}
  0x3c   : > { %s3360_s12 = sld [smem:[#allocation26_spill]]  ;;  %s2901_s15 = sadd.s32 1, %s2712_s24  }
  0x3d   : > { %3361 = sst [smem:[#allocation20_spill]] %s2901_s15  ;;  %s40_s19 = ssub.s32 %s2712_s24, %s2901_s15 }
  0x3e   : > { %s43_s17 = sadd.s32 1, %s2708_s23  ;;  %p41_p4 = scmp.eq.s32.totalorder %s40_s19, 0 }
  0x3f   : > { %p50_p6 = scmp.ne.s32.totalorder %s2708_s23, %s2704_s22  ;;  %p51_p12 = scmp.eq.s32.totalorder %s2712_s24, 0 }
  0x40   : > { %p2406_p0 = scmp.lt.s32.totalorder %s2712_s24, 2  ;;  %p3363_p3 = scmp.eq.s32.totalorder %s2842_s25, 1 }
  0x41   : > { %s2911_s20 = scalar_select %p41_p4, %s2708_s23, %s43_s17  }
  0x42   : > { %2391 = dma.hbm_to_vmem [thread:$0]  (!%p2870_p11), %s3360_s12, 256, %s482_s26, [#allocation9], %s2717_s30, %s2717_s30, %s2718_s18  }
  0x43   : > { %3362 = sst [smem:[#allocation21_spill]] %s2911_s20  ;;  %p52_p5 = por %p51_p12, %p50_p6 }
  0x44   : > { %p2915_p10 = por %p3363_p3, %p50_p6  ;;  %s2920_s21 = sand.u32 1, %s2708_s23  }
  0x45   : > { %s2144_s26 = sshll.u32 %s2712_s24, 6  ;;  %s2143_s30 = sshll.u32 %s2920_s21, 2 }
  0x46   : > { %s3364_s28 = scalar_select %p2915_p10, 1, 0 }
  0x47   : > { %s3366_s0 = sld [smem:[#allocation23_spill]]  ;;  %s508_s17 = scalar_lea.vmem [#allocation2], %s2143_s30 }
  0x48   : > { %3365 = sst [smem:[#allocation22_spill]] %s3364_s28  ;;  %s515_s7 = sshll.u32 %s508_s17, 4  ;;  %s516_s7 = int_to_ptr.vmem [resolvable:$true] %s515_s7 }
  0x49   : > { %p2929_p11 = pnand %p2406_p0, %p52_p5  ;;  %s505_s20 = scalar_lea.sflag [#allocation3], %s2920_s21 }
  0x4b   : > { %p2582_p1 = pneg %p2929_p11 }
  0x4d   : > { %s2927_s19 = scalar_lea.hbm %s3366_s0, %s2144_s26  ;;  %s2585_s18 = scalar_lea.hbm %s3366_s0, 128 }
  0x4e   : > { %s2580_s23 = scalar_lea.hbm %s2927_s19, 64  ;;  %p2586_p2 = scmp.lt.s32.totalorder %s2927_s19, %s3366_s0 }
  0x4f   : > { %p2581_p7 = scmp.ne.s32.totalorder %s2927_s19, %s2580_s23  ;;  %p2587_p4 = scmp.lt.s32.totalorder %s2585_s18, %s2580_s23 }
  0x51   : > { %p2583_p9 = pnand %p2582_p1, %p2581_p7  ;;  %p2588_p6 = por %p2587_p4, %p2586_p2 }
  0x53   : > { %p2584_p13 = pneg %p2583_p9 }
  0x55   : > { %p2589_p12 = pnand %p2588_p6, %p2584_p13 }
  0x57   : > { %2592 = shalt.err (!%p2589_p12)
}
  0x58   : > { %s2593_s12 = scalar_lea.vmem %s516_s7, 64  ;;  %s2719_s15 = smov [#allocation2]  }
  0x59   : > { %p2594_p0 = scmp.ne.s32.totalorder %s516_s7, %s2593_s12  ;;  %s2598_s28 = sshll.u32 %s2719_s15, 4  ;;  %s2599_s28 = int_to_ptr.vmem [resolvable:$false] %s2598_s28 }
  0x5a   : > { %s2600_s26 = scalar_lea.vmem %s2599_s28, 128  ;;  %p2601_p7 = scmp.lt.s32.totalorder %s516_s7, %s2599_s28 }
  0x5b   : > { %p2596_p5 = pnand %p2594_p0, %p2582_p1  ;;  %p2602_p9 = scmp.lt.s32.totalorder %s2600_s26, %s2593_s12 }
  0x5d   : > { %p2597_p3 = pneg %p2596_p5  ;;  %p2603_p10 = por %p2602_p9, %p2601_p7 }
  0x5f   : > { %p2604_p8 = pnand %p2603_p10, %p2597_p3 }
  0x61   : > { %2607 = shalt.err (!%p2604_p8)
}
  0x62   : > { %2395 = dma.hbm_to_vmem [thread:$0]  (!%p2929_p11), %s2927_s19, 64, %s516_s7, %s505_s20  }
  0x63   : > { %s2145_s23 = sshll.u32 %s2712_s24, 4  ;;  %s546_s12 = scalar_lea.vmem [#allocation5], %s2920_s21 }
  0x64   : > { %s2959_s15 = scalar_lea.hbm %s3319_s4, %s2145_s23  ;;  %s553_s28 = sshll.u32 %s546_s12, 4  ;;  %s554_s28 = int_to_ptr.vmem [resolvable:$true] %s553_s28 }
  0x65   : > { %s3368_s16 = sand.u32 1, %s2712_s24   ;;  %s2608_s26 = scalar_lea.hbm %s2959_s15, 16 }
  0x66   : > { %s544_s17 = scalar_lea.sflag [#allocation6], %s3368_s16  ;;  %p2609_p8 = scmp.ne.s32.totalorder %s2959_s15, %s2608_s26 }
  0x67   : > { %s2613_s19 = scalar_lea.hbm %s3319_s4, 32  ;;  %p2614_p2 = scmp.lt.s32.totalorder %s2959_s15, %s3319_s4 }
  0x68   : > { %p2611_p10 = pnand %p2609_p8, %p2582_p1  ;;  %p2615_p4 = scmp.lt.s32.totalorder %s2613_s19, %s2608_s26 }
  0x6a   : > { %p2612_p13 = pneg %p2611_p10  ;;  %p2616_p6 = por %p2615_p4, %p2614_p2 }
  0x6c   : > { %p2617_p12 = pnand %p2616_p6, %p2612_p13 }
  0x6e   : > { %2620 = shalt.err (!%p2617_p12)
}
  0x6f   : > { %s2621_s21 = scalar_lea.vmem %s554_s28, 16  ;;  %s2720_s18 = smov [#allocation5]  }
  0x70   : > { %p2622_p0 = scmp.ne.s32.totalorder %s554_s28, %s2621_s21  ;;  %s2626_s12 = sshll.u32 %s2720_s18, 4  ;;  %s2627_s12 = int_to_ptr.vmem [resolvable:$false] %s2626_s12 }
  0x71   : > { %s2628_s16 = scalar_lea.vmem %s2627_s12, 32  ;;  %p2629_p7 = scmp.lt.s32.totalorder %s554_s28, %s2627_s12 }
  0x72   : > { %p2624_p5 = pnand %p2622_p0, %p2582_p1  ;;  %p2630_p9 = scmp.lt.s32.totalorder %s2628_s16, %s2621_s21 }
  0x74   : > { %p2625_p3 = pneg %p2624_p5  ;;  %p2631_p8 = por %p2630_p9, %p2629_p7 }
  0x76   : > { %p2632_p10 = pnand %p2631_p8, %p2625_p3 }
  0x78   : > { %2635 = shalt.err (!%p2632_p10)
}
  0x79   : > { %2398 = dma.hbm_to_vmem [thread:$0]  (!%p2929_p11), %s2959_s15, 16, %s554_s28, %s544_s17  }
  0x7a   : > { %p3369_p13 = scmp.ne.s32.totalorder %s3356_s29, 0 }
  0x7b   : > { %s2985_s26 = sand.u32 (!%p3369_p13), 1, %s2704_s22   ;;  %p3370_p1 = scmp.ne.s32.totalorder (!%p3369_p13), %s3353_s27, 0 }
  0x7c   : > { %562 = sbr.rel (%p3369_p13) target bundleno = 3981 (0xf8d), region = 84  ;;  %s2147_s7 = sshll.u32 (!%p3369_p13), %s2985_s26, 2 }
  0x7d   : > { %s565_s20 = scalar_lea.sflag (!%p3369_p13), [#allocation3], %s2985_s26  ;;  %s568_s19 = scalar_lea.vmem (!%p3369_p13), [#allocation2], %s2147_s7 }
  0x81   : > { %2679 = dma.done.wait (%p3370_p1), %s565_s20, 64  }
  0x82   : > { %2681 = vsyncadd (%p3370_p1), %s565_s20, 4294967232  ;;  %s573_s11 = sand.u32 1, %s2842_s25   ;;  %s576_s15 = scalar_lea.vmem [#allocation5], %s2985_s26 }
  0x83   : > { %s574_s29 = scalar_lea.sflag [#allocation6], %s573_s11 }
  0x84   : > { %2683 = dma.done.wait (%p3370_p1), %s574_s29, 16  }
  0x85   : > { %2685 = vsyncadd (%p3370_p1), %s574_s29, 4294967280  ;;  %p3371_p11 = scmp.eq.s32.totalorder %s2842_s25, 0 }
  0x87   : > { %2687 = dma.done.wait (%p3371_p11), [#allocation6], 256   ;;  %p3372_p2 = pmov %p3371_p11 }
  0x89   : > { %2689 = vsyncadd (%p3372_p2), [#allocation6], 4294967040  ;;  %p3373_p4 = pmov %p3372_p2 }
  0x8a   : > { %p3374_p6 = pmov %p3372_p2 }
  0x8b   : > { %2691 = dma.done.wait (%p3373_p4), [#allocation9], 512  }
  0x8c   : > { %2693 = vsyncadd (%p3374_p6), [#allocation9], 4294966784  ;;  %v2721_v0 = vmov 0.0   ;;  %vm2722_vm0 = vmmov 0   ;;  %v2464_v1 = vld [vmem:[%s3320_s5 + $0x8] sm:$0xff]   ;;  %v2465_v2 = vld [vmem:[%s3320_s5] sm:$0xff]  }
  0x8d   : > { %2244 = vmatprep.subr.bf16.mxu1 %v2721_v0  ;;  %2248 = vmatprep.mubr.msk.bf16.mxu1 %vm2722_vm0, %v2721_v0  ;;  %v3022_v3 = vld [vmem:[%s568_s19] sm:$0xf]  ;;  %vm696_vm1 = vcmask 261120   ;;  %v2466_v4 = vld [vmem:[%s3321_s6 + $0x8] sm:$0xff]   ;;  %p653_p12 = scmp.lt.s32.totalorder %s2842_s25, 1  ;;  %s2723_s16 = smov 124  }
  0x8e   : > { %2260 = vmatprep.subr.bf16.mxu0 %v2721_v0  ;;  %2264 = vmatprep.mubr.msk.bf16.mxu0 %vm2722_vm0, %v2721_v0  ;;  %v2467_v5 = vld [vmem:[%s3321_s6] sm:$0xff]   ;;  %s2724_s19 = smov 116   ;;  %s2725_s17 = smov 8   ;;  %vm861_vm2 = vcmask 31744   ;;  %v2468_v22 = vld [vmem:[#allocation7 + $0x8] sm:$0xff]   ;;  %v2469_v23 = vld [vmem:[#allocation7] sm:$0xff]  }
  0x8f   : > { %2245 = vmatpush3.bf16.msra.mxu1 %v2464_v1  ;;  %s654_s20 = scalar_select %p653_p12, %s2842_s25, 1  ;;  %2261 = vmatpush3.bf16.msra.mxu0 %v2468_v22  ;;  %v2728_v34 = vmov 0   ;;  %vm876_vm3 = vcmask 64512   ;;  %vm969_vm4 = vcmask 1043456   ;;  %v2155_v54 = vld [vmem:[%s576_s15] ss:$0 sm:$0xff] }
  0x90   : > { %2246 = vmatprep.subr.bf16.mxu1 %v2721_v0  ;;  %2262 = vmatprep.subr.bf16.mxu0 %v2721_v0  ;;  %s2726_s18 = smov 120   ;;  %s2727_s12 = smov 4   ;;  %vm1892_vm6 = vcmask 523264   ;;  %vm1967_vm7 = vcmask 257024  }
  0x91   : > { %s3050_s11 = sshll.u32 %s654_s20, 3  ;;  %2463 = vset.pattern.permute.xlu0 %v2728_v34  ;;  %2462 = vset.pattern.permute.xlu1 %v2728_v34  ;;  %s2730_s15 = smov 16  }
  0x92   : > { %s656_s28 = scalar_lea.vmem %s3316_s1, %s3050_s11  ;;  %s660_s21 = scalar_lea.vmem %s3317_s2, %s3050_s11 }
  0x93   : > { %2247 = vmatpush3.bf16.msra.mxu1 %v2465_v2  ;;  %v3057_v15 = vld [vmem:[%s656_s28] sm:$0xff]  ;;  %2263 = vmatpush3.bf16.msra.mxu0 %v2469_v23  ;;  %s2731_s29 = smov 100   ;;  %s2732_s27 = smov 24  }
  0x94   : > { %2252 = vmatprep.subr.bf16.mxu1 %v2721_v0  ;;  %v3064_v17 = vld [vmem:[%s660_s21] sm:$0xff]  ;;  %2279 = vmatprep.subr.mxu0 %v2721_v0  ;;  %s2733_s28 = smov 112  }
  0x96   : > { %2249 = vmatmul.mubr.msk.bf16.vlgmr.msra.gmra.mxu1 %vm696_vm1, %v3022_v3  ;;  %2265 = vmatmul.mubr.msk.bf16.vlgmr.msra.gmra.mxu0 %vm696_vm1, %v3022_v3 }
  0x97   : > { %2253 = vmatpush3.bf16.msra.mxu1 %v2466_v4  ;;  %2256 = vmatprep.mubr.msk.bf16.mxu1 %vm2722_vm0, %v2721_v0 }
  0x98   : > { %2254 = vmatprep.subr.bf16.mxu1 %v2721_v0  ;;  %2281 = vmatprep.mubr.msk.f32.mxu0 %vm2722_vm0, %v2721_v0 }
  0x9b   : > { %2255 = vmatpush3.bf16.msra.mxu1 %v2467_v5 }
  0x9c   : > { %2268 = vmatprep.subr.mxu1 %v2721_v0 }
  0x9e   : > { %2257 = vmatmul.mubr.msk.bf16.vlgmr.msra.gmra.mxu1 %vm696_vm1, %v3022_v3 }
  0x9f   : > { %2270 = vmatprep.mubr.msk.f32.mxu1 %vm2722_vm0, %v2721_v0 }
 0x156   : > { %v734_v6 = vpop.f32.mrf.mxu1  ;;  %v847_v36 = vpop.f32.mrf.mxu0 }
 0x157   : > { %v3041_v7 = vmul.f32 0.35355338, %v734_v6  ;;  %v3103_v49 = vpack.c.bf16 %v847_v36, %v847_v36 }
 0x158   : > { %v2250_v8 = vpop.f32.mrf.mxu1  ;;  %v2266_v37 = vpop.f32.mrf.mxu0 }
 0x159   : > { %855 = vrot.lane.b32.xlu1 %v3041_v7, %s2723_s16  ;;  %v853_v51 = vmul.f32 %v3041_v7, %v3057_v15  ;;  %v971_v53 = vsel %vm969_vm4, %v3103_v49, 0 }
 0x15a   : > { %v737_v9 = vpop.f32.mrf.mxu1  ;;  %v850_v38 = vpop.f32.mrf.mxu0 }
 0x15c   : > { %v2251_v10 = vpop.f32.mrf.mxu1  ;;  %v2267_v39 = vpop.f32.mrf.mxu0 }
 0x15d   : > { %1020 = vrot.lane.b32.xlu1 %v3041_v7, %s2724_s19 }
 0x15e   : > { %v3047_v11 = vpop.f32.mrf.mxu1 }
 0x15f   : > { %867 = vrot.lane.b32.xlu0 %v3047_v11, %s2723_s16  ;;  %v865_v46 = vmul.f32 %v3047_v11, %v3057_v15  ;;  %s1970_s16 = scalar_lea.sflag [#allocation4], %s2985_s26 }
 0x160   : > { %v2258_v12 = vpop.f32.mrf.mxu1 }
 0x162   : > { %v794_v13 = vpop.f32.mrf.mxu1 }
 0x163   : > { %1031 = vrot.lane.b32.xlu0 %v3047_v11, %s2724_s19  ;;  %s664_s19 = scalar_lea.vmem %s3318_s3, %s3050_s11  ;;  %s2729_s11 = smov 108  }
 0x164   : > { %v2259_v14 = vpop.f32.mrf.mxu1  ;;  %v669_v35 = vld [vmem:[%s664_s19] sm:$0xff]  ;;  %s2735_s19 = smov [#allocation11]  }
 0x167   : > { %1016 = vrot.lane.b32.xlu0 %v3057_v15, %s2725_s17 }
 0x1cb   : > { %v856_v16 = vpop.permute.xlu1 %855 }
 0x1cf   : > { %v3066_v18 = vpop.permute.xlu1 %1020 }
 0x1d0   : > { %v1023_v19 = vsel %vm861_vm2, %v3066_v18, %v856_v16 }
 0x1d1   : > { %v1024_v20 = vmul.f32 %v1023_v19, %v3064_v17  ;;  %v868_v21 = vpop.permute.xlu0 %867 }
 0x1d3   : > { %1026 = vrot.lane.b32.xlu0 %v1024_v20, %s2725_s17 }
 0x1d5   : > { %v3071_v24 = vpop.permute.xlu0 %1031 }
 0x1d6   : > { %v1034_v25 = vsel %vm861_vm2, %v3071_v24, %v868_v21 }
 0x1d7   : > { %v1035_v26 = vmul.f32 %v1034_v25, %v3064_v17 }
 0x1d9   : > { %1037 = vrot.lane.b32.xlu1 %v1035_v26, %s2725_s17  ;;  %v1017_v27 = vpop.permute.xlu0 %1016  ;;  %s652_s17 = scalar_lea.vmem [#allocation11], %s2147_s7 }
 0x1da   : > { %v1019_v28 = vmul.f32 %v1017_v27, %v3041_v7  ;;  %v1030_v31 = vmul.f32 %v1017_v27, %v3047_v11  ;;  %s1983_s23 = sshll.u32 %s652_s17, 4  ;;  %s1984_s23 = int_to_ptr.vmem [resolvable:$true] %s1983_s23 }
 0x1db   : > { %s2636_s20 = scalar_lea.vmem %s1984_s23, 64 }
 0x1dc   : > { %p2637_p0 = scmp.ne.s32.totalorder %s1984_s23, %s2636_s20 }
 0x245   : > { %v1027_v29 = vpop.permute.xlu0 %1026 }
 0x246   : > { %v1029_v30 = vadd.f32 %v1027_v29, %v1019_v28 }
 0x248   : > { %1042 = vrot.lane.b32.xlu0 %v1029_v30, %s2726_s18 }
 0x24b   : > { %v1038_v32 = vpop.permute.xlu1 %1037 }
 0x24c   : > { %v1040_v33 = vadd.f32 %v1038_v32, %v1030_v31  ;;  %858 = vrot.lane.b32.xlu0 %v3041_v7, %s2727_s12 }
 0x24e   : > { %1045 = vrot.lane.b32.xlu1 %v1040_v33, %s2726_s18 }
 0x252   : > { %870 = vrot.lane.b32.xlu1 %v3047_v11, %s2727_s12 }
 0x256   : > { %672 = vperm.xlu1 %2462, %v669_v35  }
 0x2ba   : > { %v1043_v40 = vpop.permute.xlu0 %1042 }
 0x2be   : > { %v859_v42 = vpop.permute.xlu0 %858 }
 0x2bf   : > { %v862_v43 = vsel %vm861_vm2, %v856_v16, %v859_v42 }
 0x2c0   : > { %v1046_v41 = vpop.permute.xlu1 %1045  ;;  %v863_v48 = vmul.f32 %v862_v43, %v3064_v17 }
 0x2c1   : > { %2280 = vmatpush3.xpose.msk.msra.mxu0 %vm876_vm3, %v1046_v41 }
 0x2c2   : > { %2284 = vmatprep.subr.bf16.mxu0 %v2721_v0  ;;  %v864_v52 = vadd.f32 %v863_v48, %v853_v51 }
 0x2c4   : > { %v871_v44 = vpop.permute.xlu1 %870  ;;  %2282 = vmatmul.mubr.msk.f32.vlgmr.msra.gmra.mxu0 %vm876_vm3, %v1043_v40  ;;  %v1183_v40 = vld [vmem:[%s3323_s8 + $0x4] sm:$0xf] }
 0x2c5   : > { %v873_v45 = vsel %vm861_vm2, %v868_v21, %v871_v44  ;;  %2286 = vmatprep.mubr.msk.bf16.mxu0 %vm2722_vm0, %v2721_v0  ;;  %v1188_v43 = vsel %vm969_vm4, %v1183_v40, 0 }
 0x2c6   : > { %v874_v47 = vmul.f32 %v873_v45, %v3064_v17 }
 0x2c8   : > { %v875_v50 = vadd.f32 %v874_v47, %v865_v46 }
 0x2ca   : > { %2269 = vmatpush3.xpose.msk.msra.mxu1 %vm876_vm3, %v875_v50 }
 0x2cb   : > { %2273 = vmatprep.subr.bf16.mxu1 %v2721_v0 }
 0x2cd   : > { %2271 = vmatmul.mubr.msk.f32.vlgmr.msra.gmra.mxu1 %vm876_vm3, %v864_v52  ;;  %v1014_v52 = vld [vmem:[%s3323_s8] sm:$0xf] }
 0x2ce   : > { %2274 = vmatpush3.bf16.msra.mxu1 %v971_v53  ;;  %2275 = vmatprep.mubr.msk.bf16.mxu1 %vm2722_vm0, %v2721_v0  ;;  %v1234_v53 = vsel %vm969_vm4, %v1014_v52, 0 }
 0x2cf   : > { %2290 = vmatprep.subr.bf16.mxu1 %v2721_v0 }
 0x2d1   : > { %v673_v55 = vpop.permute.xlu1 %672 }
 0x2d2   : > { %vm678_vm5 = vcmp.lt.s32.totalorder %v673_v55, %v2155_v54 }
 0x2d3   : > { %v3118_v56 = vsel %vm678_vm5, -3.4028235e+38, %v2721_v0 }
 0x384   : > { %v1117_v57 = vpop.f32.mrf.mxu0 }
 0x385   : > { %v1118_v58 = vadd.f32 %v1117_v57, %v3118_v56 }
 0x386   : > { %v2283_v59 = vpop.f32.mrf.mxu0 }
 0x387   : > { %v1121_v60 = vsel %vm876_vm3, %v1118_v58, -inf }
 0x388   : > { %1122 = vmax.xlane.f32.xlu0 %v1121_v60 }
 0x38d   : > { %v949_v61 = vpop.f32.mrf.mxu1 }
 0x38e   : > { %v950_v12 = vadd.f32 %v949_v61, %v3118_v56 }
 0x38f   : > { %v2272_v62 = vpop.f32.mrf.mxu1 }
 0x390   : > { %v953_v14 = vsel %vm876_vm3, %v950_v12, -inf }
 0x39e   : > { %1134 = vrot.lane.b32.xlu0 %v3103_v49, %s2726_s18  ;;  %s2734_s18 = smov 104  }
 0x3a2   : > { %1280 = vrot.lane.b32.xlu0 %v3041_v7, %s2729_s11 }
 0x3a6   : > { %1276 = vrot.lane.b32.xlu0 %v3057_v15, %s2730_s15 }
 0x411   : > { %v1123_v63 = vpop.xlane.xlu0 %1122 }
 0x412   : > { %v1124_v1 = vsub.f32 %v1118_v58, %v1123_v63 }
 0x414   : > { %v1125_v2 = vmul.f32 1.442695, %v1124_v1 }
 0x415   : > { %v1135_v4 = vpop.permute.xlu0 %1134 }
 0x416   : > { %2478 = vpow2.f32 %v1125_v2  ;;  %v1140_v5 = vsel %vm969_vm4, %v1135_v4, 0 }
 0x417   : > { %2285 = vmatpush3.bf16.msra.mxu0 %v1140_v5 }
 0x418   : > { %2296 = vmatprep.subr.bf16.mxu0 %v2721_v0 }
 0x419   : > { %v3128_v6 = vpop.permute.xlu0 %1280 }
 0x41a   : > { %v1283_v8 = vsel %vm861_vm2, %v3128_v6, %v3066_v18 }
 0x41b   : > { %v1284_v9 = vmul.f32 %v1283_v8, %v3064_v17 }
 0x41d   : > { %1286 = vrot.lane.b32.xlu0 %v1284_v9, %s2730_s15 }
 0x423   : > { %v2479_v10 = vpop.eup %2478 }
 0x424   : > { %v1127_v13 = vsel %vm876_vm3, %v2479_v10, 0.0 }
 0x425   : > { %1128 = vadd.xlane.f32.xlu1 %v1127_v13 }
 0x429   : > { %954 = vmax.xlane.f32.xlu1 %v953_v14 }
 0x43a   : > { %1291 = vrot.lane.b32.xlu1 %v3047_v11, %s2729_s11  ;;  %s3375_s11 = sld [smem:[#allocation22_spill]] }
 0x440   : > { %p3378_p5 = scmp.ne.s32.totalorder %s3375_s11, 0 }
 0x442   : > { %p2638_p3 = pnand %p2637_p0, %p3378_p5 }
 0x444   : > { %p2639_p7 = pneg %p2638_p3 }
 0x4ae   : > { %v1129_v16 = vpop.xlane.xlu1 %1128 }
 0x4af   : > { %2480 = vrcp.f32 %v1129_v16 }
 0x4b2   : > { %v955_v19 = vpop.xlane.xlu1 %954 }
 0x4b3   : > { %v956_v26 = vsub.f32 %v950_v12, %v955_v19 }
 0x4b5   : > { %v957_v27 = vmul.f32 1.442695, %v956_v26 }
 0x4b6   : > { %v1292_v20 = vpop.permute.xlu1 %1291 }
 0x4b7   : > { %v1294_v18 = vsel %vm861_vm2, %v1292_v20, %v3071_v24  ;;  %2482 = vpow2.f32 %v957_v27  ;;  %v1277_v24 = vpop.permute.xlu0 %1276 }
 0x4b8   : > { %v1295_v21 = vmul.f32 %v1294_v18, %v3064_v17  ;;  %v1290_v30 = vmul.f32 %v1277_v24, %v3047_v11  ;;  %v1279_v34 = vmul.f32 %v1277_v24, %v3041_v7 }
 0x4ba   : > { %1297 = vrot.lane.b32.xlu1 %v1295_v21, %s2730_s15 }
 0x4bb   : > { %v1287_v33 = vpop.permute.xlu0 %1286 }
 0x4bc   : > { %v2481_v22 = vpop.eup %2480  ;;  %v1289_v35 = vadd.f32 %v1287_v33, %v1279_v34  ;;  %v1442_v34 = vld [vmem:[%s3323_s8 + $0x8] sm:$0xf] }
 0x4bd   : > { %v1131_v23 = vmul.f32 %v2481_v22, %v2479_v10 }
 0x4bf   : > { %v1132_v25 = vpack.c.bf16 %v1131_v23, %v1131_v23 }
 0x4c1   : > { %2287 = vmatmul.mubr.msk.bf16.vlgmr.msra.gmra.mxu0 %vm876_vm3, %v1132_v25 }
 0x4c2   : > { %2298 = vmatprep.mubr.msk.bf16.mxu0 %vm2722_vm0, %v2721_v0  ;;  %2297 = vmatpush3.bf16.msra.mxu0 %v1234_v53 }
 0x4c3   : > { %2313 = vmatprep.subr.bf16.mxu0 %v2721_v0 }
 0x4c4   : > { %v2483_v28 = vpop.eup %2482 }
 0x4c5   : > { %v959_v29 = vsel %vm876_vm3, %v2483_v28, 0.0 }
 0x4de   : > { %960 = vadd.xlane.f32.xlu1 %v959_v29 }
 0x4ef   : > { %1505 = vrot.lane.b32.xlu1 %v3047_v11, %s2731_s29 }
 0x4f3   : > { %1490 = vrot.lane.b32.xlu1 %v3057_v15, %s2732_s27 }
 0x52c   : > { %v1298_v31 = vpop.permute.xlu1 %1297 }
 0x52d   : > { %v1300_v32 = vadd.f32 %v1298_v31, %v1290_v30 }
 0x52f   : > { %1305 = vrot.lane.b32.xlu0 %v1300_v32, %s2733_s28 }
 0x533   : > { %1302 = vrot.lane.b32.xlu0 %v1289_v35, %s2733_s28  ;;  %v1447_v35 = vsel %vm969_vm4, %v1442_v34, 0  ;;  %v2475_v34 = vld [vmem:[%s3328_s13 + $0x10] sm:$0xff]  }
 0x567   : > { %v961_v36 = vpop.xlane.xlu1 %960 }
 0x568   : > { %2484 = vrcp.f32 %v961_v36 }
 0x56b   : > { %v1506_v37 = vpop.permute.xlu1 %1505 }
 0x56c   : > { %v1508_v38 = vsel %vm861_vm2, %v1506_v37, %v1292_v20 }
 0x56d   : > { %v1509_v15 = vmul.f32 %v1508_v38, %v3064_v17 }
 0x56f   : > { %1511 = vrot.lane.b32.xlu1 %v1509_v15, %s2732_s27  ;;  %v1491_v16 = vpop.permute.xlu1 %1490 }
 0x570   : > { %v1504_v18 = vmul.f32 %v1491_v16, %v3047_v11  ;;  %v1493_v26 = vmul.f32 %v1491_v16, %v3041_v7 }
 0x575   : > { %v2485_v39 = vpop.eup %2484 }
 0x576   : > { %v963_v41 = vmul.f32 %v2485_v39, %v2483_v28 }
 0x578   : > { %v964_v42 = vpack.c.bf16 %v963_v41, %v963_v41 }
 0x57a   : > { %2276 = vmatmul.mubr.msk.bf16.vlgmr.msra.gmra.mxu1 %vm876_vm3, %v964_v42 }
 0x57b   : > { %2291 = vmatpush3.bf16.msra.mxu1 %v1188_v43  ;;  %2292 = vmatprep.mubr.msk.bf16.mxu1 %vm2722_vm0, %v2721_v0 }
 0x57c   : > { %2302 = vmatprep.subr.mxu1 %v2721_v0 }
 0x581   : > { %v1176_v44 = vpop.f32.mrf.mxu0 }
 0x582   : > { %v1182_v45 = vpack.c.bf16 %v1176_v44, %v1176_v44 }
 0x583   : > { %v2288_v46 = vpop.f32.mrf.mxu0 }
 0x584   : > { %2293 = vmatmul.mubr.msk.bf16.vlgmr.msra.gmra.mxu1 %vm876_vm3, %v1182_v45 }
 0x585   : > { %v1179_v47 = vpop.f32.mrf.mxu0  ;;  %2304 = vmatprep.mubr.msk.f32.mxu1 %vm2722_vm0, %v2721_v0 }
 0x587   : > { %v2289_v48 = vpop.f32.mrf.mxu0 }
 0x5a1   : > { %v1306_v50 = vpop.permute.xlu0 %1305 }
 0x5a2   : > { %2303 = vmatpush3.xpose.msk.msra.mxu1 %vm876_vm3, %v1306_v50 }
 0x5a3   : > { %2307 = vmatprep.subr.bf16.mxu1 %v2721_v0 }
 0x5a5   : > { %v1303_v51 = vpop.permute.xlu0 %1302 }
 0x5a6   : > { %2305 = vmatmul.mubr.msk.f32.vlgmr.msra.gmra.mxu1 %vm876_vm3, %v1303_v51 }
 0x5a7   : > { %2309 = vmatprep.mubr.msk.bf16.mxu1 %vm2722_vm0, %v2721_v0 }
 0x5e1   : > { %v1512_v20 = vpop.permute.xlu1 %1511 }
 0x5e2   : > { %v1514_v22 = vadd.f32 %v1512_v20, %v1504_v18 }
 0x63a   : > { %v1007_v54 = vpop.f32.mrf.mxu1 }
 0x63b   : > { %v1013_v55 = vpack.c.bf16 %v1007_v54, %v1007_v54 }
 0x63c   : > { %v2277_v57 = vpop.f32.mrf.mxu1 }
 0x63d   : > { %2299 = vmatmul.mubr.msk.bf16.vlgmr.msra.gmra.mxu0 %vm876_vm3, %v1013_v55 }
 0x63e   : > { %v1010_v58 = vpop.f32.mrf.mxu1  ;;  %2315 = vmatprep.mubr.msk.bf16.mxu0 %vm2722_vm0, %v2721_v0  ;;  %2314 = vmatpush3.bf16.msra.mxu0 %v1447_v35  ;;  %v2476_v35 = vld [vmem:[%s3328_s13 + $0x8] sm:$0xff]  }
 0x63f   : > { %2324 = vmatprep.subr.bf16.mxu0 %v2721_v0 }
 0x640   : > { %v2278_v59 = vpop.f32.mrf.mxu1 }
 0x644   : > { %v3180_v60 = vpop.f32.mrf.mxu1 }
 0x646   : > { %v2294_v61 = vpop.f32.mrf.mxu1 }
 0x648   : > { %v1227_v62 = vpop.f32.mrf.mxu1 }
 0x64a   : > { %v2295_v63 = vpop.f32.mrf.mxu1 }
 0x666   : > { %v1377_v1 = vpop.f32.mrf.mxu1 }
 0x667   : > { %v1378_v2 = vadd.f32 %v1377_v1, %v3118_v56 }
 0x668   : > { %v2306_v4 = vpop.f32.mrf.mxu1 }
 0x669   : > { %v1381_v5 = vsel %vm876_vm3, %v1378_v2, -inf }
 0x66a   : > { %1382 = vmax.xlane.f32.xlu0 %v1381_v5 }
 0x680   : > { %1494 = vrot.lane.b32.xlu0 %v3041_v7, %s2731_s29 }
 0x6f3   : > { %v1383_v8 = vpop.xlane.xlu0 %1382 }
 0x6f4   : > { %v1384_v9 = vsub.f32 %v1378_v2, %v1383_v8  ;;  %v1704_v8 = vunpack.c.l.bf16 %v3022_v3  ;;  %v2470_v3 = vld [vmem:[#allocation8 + $0x8] sm:$0xff]  }
 0x6f6   : > { %v1385_v10 = vmul.f32 1.442695, %v1384_v9 }
 0x6f7   : > { %v1495_v12 = vpop.permute.xlu0 %1494 }
 0x6f8   : > { %2486 = vpow2.f32 %v1385_v10  ;;  %v1497_v13 = vsel %vm861_vm2, %v1495_v12, %v3128_v6 }
 0x6f9   : > { %v1498_v14 = vmul.f32 %v1497_v13, %v3064_v17 }
 0x6fb   : > { %1500 = vrot.lane.b32.xlu1 %v1498_v14, %s2732_s27  ;;  %s3376_s27 = sld [smem:[#allocation27_spill]] }
 0x6fd   : > { %v1270_v19 = vpop.f32.mrf.mxu0 }
 0x6fe   : > { %v1271_v44 = vadd.f32 %v1270_v19, %v3180_v60 }
 0x6ff   : > { %v2300_v21 = vpop.f32.mrf.mxu0  ;;  %1393 = vrot.lane.b32.xlu1 %v3103_v49, %s2733_s28  ;;  %s2197_s28 = sshll.u32 %s2842_s25, 6  ;;  %s2640_s25 = sshll.u32 %s2735_s19, 4  ;;  %s2641_s25 = int_to_ptr.vmem [resolvable:$false] %s2640_s25 }
 0x700   : > { %s2642_s7 = scalar_lea.vmem %s2641_s25, 128  ;;  %p2643_p9 = scmp.lt.s32.totalorder %s1984_s23, %s2641_s25 }
 0x701   : > { %v1273_v23 = vpop.f32.mrf.mxu0  ;;  %p2644_p8 = scmp.lt.s32.totalorder %s2642_s7, %s2636_s20 }
 0x703   : > { %v2301_v25 = vpop.f32.mrf.mxu0  ;;  %1519 = vrot.lane.b32.xlu1 %v1514_v22, %s2734_s18  ;;  %p2645_p10 = por %p2644_p8, %p2643_p9 }
 0x704   : > { %v2471_v25 = vld [vmem:[#allocation10 + $0x8] sm:$0xff]  }
 0x705   : > { %v2487_v6 = vpop.eup %2486  ;;  %p2646_p13 = pnand %p2645_p10, %p2639_p7 }
 0x706   : > { %v1387_v17 = vsel %vm876_vm3, %v2487_v6, 0.0 }
 0x707   : > { %1388 = vadd.xlane.f32.xlu0 %v1387_v17  ;;  %v2473_v17 = vld [vmem:[#allocation10] sm:$0xff]  }
 0x76d   : > { %v1501_v27 = vpop.permute.xlu1 %1500 }
 0x76e   : > { %v1503_v28 = vadd.f32 %v1501_v27, %v1493_v26 }
 0x770   : > { %1516 = vrot.lane.b32.xlu1 %v1503_v28, %s2734_s18 }
 0x771   : > { %v1394_v11 = vpop.permute.xlu1 %1393 }
 0x772   : > { %v1399_v29 = vsel %vm969_vm4, %v1394_v11, 0 }
 0x773   : > { %2308 = vmatpush3.bf16.msra.mxu1 %v1399_v29  ;;  %v2181_v29 = vld [vmem:[%s3324_s9] ss:$0 sm:$0xff] }
 0x774   : > { %2319 = vmatprep.subr.mxu1 %v2721_v0 }
 0x775   : > { %v1520_v33 = vpop.permute.xlu1 %1519 }
 0x790   : > { %v1389_v24 = vpop.xlane.xlu0 %1388 }
 0x791   : > { %2488 = vrcp.f32 %v1389_v24 }
 0x79e   : > { %v2489_v30 = vpop.eup %2488 }
 0x79f   : > { %v1391_v31 = vmul.f32 %v2489_v30, %v2487_v6  ;;  %v2472_v6 = vld [vmem:[#allocation8] sm:$0xff]  }
 0x7a0   : > { %v2182_v30 = vld [vmem:[%s3325_s10] ss:$0 sm:$0xff] }
 0x7a1   : > { %v1392_v32 = vpack.c.bf16 %v1391_v31, %v1391_v31 }
 0x7a3   : > { %2310 = vmatmul.mubr.msk.bf16.vlgmr.msra.gmra.mxu1 %vm876_vm3, %v1392_v32 }
 0x7a4   : > { %2320 = vmatpush3.xpose.msk.msra.mxu1 %vm876_vm3, %v1520_v33  ;;  %2321 = vmatprep.mubr.msk.f32.mxu1 %vm2722_vm0, %v2721_v0 }
 0x7a5   : > { %2330 = vmatprep.subr.bf16.mxu1 %v2721_v0 }
 0x7e2   : > { %v1517_v7 = vpop.permute.xlu1 %1516 }
 0x7e3   : > { %2322 = vmatmul.mubr.msk.f32.vlgmr.msra.gmra.mxu1 %vm876_vm3, %v1517_v7  ;;  %v2474_v7 = vld [vmem:[%s3328_s13 + $0x18] sm:$0xff]  }
 0x7e4   : > { %2332 = vmatprep.mubr.msk.bf16.mxu1 %vm2722_vm0, %v2721_v0 }
 0x863   : > { %v1435_v36 = vpop.f32.mrf.mxu1 }
 0x864   : > { %v1441_v37 = vpack.c.bf16 %v1435_v36, %v1435_v36  ;;  %v2477_v36 = vld [vmem:[%s3328_s13] sm:$0xff]  }
 0x865   : > { %v2311_v38 = vpop.f32.mrf.mxu1 }
 0x866   : > { %2316 = vmatmul.mubr.msk.bf16.vlgmr.msra.gmra.mxu0 %vm876_vm3, %v1441_v37 }
 0x867   : > { %v1438_v15 = vpop.f32.mrf.mxu1  ;;  %2326 = vmatprep.mubr.msk.bf16.mxu0 %vm2722_vm0, %v2721_v0 }
 0x869   : > { %v2312_v39 = vpop.f32.mrf.mxu1 }
 0x8a3   : > { %v1591_v40 = vpop.f32.mrf.mxu1 }
 0x8a4   : > { %v1592_v41 = vadd.f32 %v1591_v40, %v3118_v56 }
 0x8a5   : > { %v2323_v42 = vpop.f32.mrf.mxu1 }
 0x8a6   : > { %v1595_v43 = vsel %vm876_vm3, %v1592_v41, -inf }
 0x8a7   : > { %1596 = vmax.xlane.f32.xlu1 %v1595_v43 }
 0x926   : > { %v1483_v45 = vpop.f32.mrf.mxu0 }
 0x927   : > { %v1489_v46 = vadd.f32 %v1483_v45, %v1271_v44 }
 0x928   : > { %v2317_v47 = vpop.f32.mrf.mxu0 }
 0x92a   : > { %v1486_v48 = vpop.f32.mrf.mxu0 }
 0x92c   : > { %v2318_v50 = vpop.f32.mrf.mxu0 }
 0x930   : > { %v1597_v51 = vpop.xlane.xlu1 %1596 }
 0x931   : > { %v1598_v52 = vsub.f32 %v1592_v41, %v1597_v51 }
 0x933   : > { %v1599_v53 = vmul.f32 1.442695, %v1598_v52 }
 0x935   : > { %2490 = vpow2.f32 %v1599_v53 }
 0x942   : > { %v2491_v54 = vpop.eup %2490 }
 0x943   : > { %v1601_v55 = vsel %vm876_vm3, %v2491_v54, 0.0 }
 0x944   : > { %1602 = vadd.xlane.f32.xlu0 %v1601_v55 }
 0x95a   : > { %1607 = vrot.lane.b32.xlu0 %v3103_v49, %s2734_s18  ;;  %v1656_v49 = vld [vmem:[%s3323_s8 + $0xc] sm:$0xf]  ;;  %s3377_s18 = sld [smem:[#allocation28_spill]] }
 0x95b   : > { %v1661_v62 = vsel %vm969_vm4, %v1656_v49, 0 }
 0x95c   : > { %2331 = vmatpush3.bf16.msra.mxu1 %v1661_v62 }
 0x95d   : > { %2344 = vmatprep.subr.bf16.mxu1 %v2721_v0 }
 0x960   : > { %s1981_s12 = scalar_lea.hbm %s3377_s18, %s2197_s28 }
 0x9cd   : > { %v1603_v56 = vpop.xlane.xlu0 %1602 }
 0x9ce   : > { %2492 = vrcp.f32 %v1603_v56 }
 0x9d1   : > { %v1608_v57 = vpop.permute.xlu0 %1607 }
 0x9d2   : > { %v1613_v58 = vsel %vm969_vm4, %v1608_v57, 0 }
 0x9d3   : > { %2325 = vmatpush3.bf16.msra.mxu0 %v1613_v58 }
 0x9d4   : > { %2336 = vmatprep.subr.bf16.mxu0 %v2721_v0 }
 0x9db   : > { %v2493_v59 = vpop.eup %2492 }
 0x9dc   : > { %v1605_v60 = vmul.f32 %v2493_v59, %v2491_v54 }
 0x9de   : > { %v1606_v61 = vpack.c.bf16 %v1605_v60, %v1605_v60 }
 0x9e0   : > { %2327 = vmatmul.mubr.msk.bf16.vlgmr.msra.gmra.mxu0 %vm876_vm3, %v1606_v61 }
 0x9e1   : > { %2340 = vmatprep.mubr.msk.bf16.mxu0 %vm2722_vm0, %v2721_v0  ;;  %2337 = vmatpush3.bf16.msra.mxu0 %v2470_v3 }
 0x9e2   : > { %2338 = vmatprep.subr.bf16.mxu0 %v2721_v0 }
 0x9e5   : > { %2339 = vmatpush3.bf16.msra.mxu0 %v2472_v6 }
 0x9e6   : > { %2352 = vmatprep.subr.bf16.mxu0 %v2721_v0 }
 0xaa0   : > { %v1649_v63 = vpop.f32.mrf.mxu0 }
 0xaa1   : > { %v1655_v1 = vpack.c.bf16 %v1649_v63, %v1649_v63 }
 0xaa2   : > { %v2328_v2 = vpop.f32.mrf.mxu0 }
 0xaa3   : > { %2333 = vmatmul.mubr.msk.bf16.vlgmr.msra.gmra.mxu1 %vm876_vm3, %v1655_v1 }
 0xaa4   : > { %v1652_v4 = vpop.f32.mrf.mxu0  ;;  %2348 = vmatprep.mubr.msk.bf16.mxu1 %vm2722_vm0, %v2721_v0  ;;  %2345 = vmatpush3.bf16.msra.mxu1 %v2471_v25 }
 0xaa5   : > { %2346 = vmatprep.subr.bf16.mxu1 %v2721_v0  ;;  %v2194_v4 = vld [vmem:[%s3329_s14] ss:$0 sm:$0xff] }
 0xaa6   : > { %v2329_v5 = vpop.f32.mrf.mxu0 }
 0xaa8   : > { %2347 = vmatpush3.bf16.msra.mxu1 %v2473_v17 }
 0xb63   : > { %v1697_v9 = vpop.f32.mrf.mxu1 }
 0xb64   : > { %v1703_v10 = vadd.f32 %v1697_v9, %v1489_v46 }
 0xb65   : > { %v2334_v12 = vpop.f32.mrf.mxu1 }
 0xb66   : > { %v3235_v13 = vadd.f32 %v1704_v8, %v1703_v10  ;;  %v2195_v8 = vld [vmem:[%s3376_s27] ss:$0 sm:$0xff] }
 0xb67   : > { %v1700_v14 = vpop.f32.mrf.mxu1 }
 0xb68   : > { %v1708_v16 = vsel %vm696_vm1, %v3235_v13, 0.0 }
 0xb69   : > { %1709 = vadd.xlane.f32.xlu1 %v1708_v16  ;;  %v2335_v19 = vpop.f32.mrf.mxu1 }
 0xbf2   : > { %v1710_v20 = vpop.xlane.xlu1 %1709 }
 0xbf3   : > { %v1712_v18 = vmul.f32 0.03125, %v1710_v20 }
 0xbf5   : > { %v1713_v21 = vsub.f32 %v3235_v13, %v1712_v18 }
 0xbf7   : > { %v1714_v22 = vmul.f32 %v1713_v21, %v1713_v21 }
 0xbf9   : > { %v1715_v23 = vsel %vm696_vm1, %v1714_v22, 0.0 }
 0xbfa   : > { %1716 = vadd.xlane.f32.xlu1 %v1715_v23 }
 0xc83   : > { %v1717_v26 = vpop.xlane.xlu1 %1716 }
 0xc84   : > { %v1718_v27 = vmul.f32 0.03125, %v1717_v26 }
 0xc86   : > { %v1719_v28 = vadd.f32 1e-05, %v1718_v27 }
 0xc88   : > { %2494 = vrsqrt.f32 %v1719_v28 }
 0xc95   : > { %v2495_v11 = vpop.eup %2494 }
 0xc96   : > { %v1721_v24 = vmul.f32 %v2495_v11, %v1713_v21 }
 0xc98   : > { %v1728_v31 = vmul.f32 %v2181_v29, %v1721_v24 }
 0xc9a   : > { %v1735_v32 = vadd.f32 %v2182_v30, %v1728_v31 }
 0xc9c   : > { %v1736_v33 = vpack.c.bf16 %v1735_v32, %v1735_v32 }
 0xc9e   : > { %2341 = vmatmul.mubr.msk.bf16.vlgmr.msra.gmra.mxu0 %vm696_vm1, %v1736_v33  ;;  %2349 = vmatmul.mubr.msk.bf16.vlgmr.msra.gmra.mxu1 %vm696_vm1, %v1736_v33 }
 0xc9f   : > { %2360 = vmatprep.mubr.msk.bf16.mxu0 %vm2722_vm0, %v2721_v0  ;;  %2353 = vmatpush3.bf16.msra.mxu0 %v2474_v7 }
 0xca0   : > { %2354 = vmatprep.subr.bf16.mxu0 %v2721_v0 }
 0xca3   : > { %2355 = vmatpush3.bf16.msra.mxu0 %v2475_v34 }
 0xca4   : > { %2356 = vmatprep.subr.bf16.mxu0 %v2721_v0 }
 0xca7   : > { %2357 = vmatpush3.bf16.msra.mxu0 %v2476_v35 }
 0xca8   : > { %2358 = vmatprep.subr.bf16.mxu0 %v2721_v0 }
 0xcab   : > { %2359 = vmatpush3.bf16.msra.mxu0 %v2477_v36 }
 0xd5e   : > { %v1790_v37 = vpop.f32.mrf.mxu0  ;;  %v1846_v38 = vpop.f32.mrf.mxu1 }
 0xd5f   : > { %v1852_v15 = vsub.f32 0.0, %v1790_v37 }
 0xd60   : > { %v2342_v39 = vpop.f32.mrf.mxu0  ;;  %v2350_v40 = vpop.f32.mrf.mxu1 }
 0xd61   : > { %v1853_v41 = vmul.f32 1.442695, %v1852_v15 }
 0xd62   : > { %v1793_v42 = vpop.f32.mrf.mxu0  ;;  %v1849_v43 = vpop.f32.mrf.mxu1 }
 0xd63   : > { %2496 = vpow2.f32 %v1853_v41 }
 0xd64   : > { %v2343_v44 = vpop.f32.mrf.mxu0  ;;  %v2351_v45 = vpop.f32.mrf.mxu1 }
 0xd70   : > { %v2497_v46 = vpop.eup %2496 }
 0xd71   : > { %v1855_v47 = vadd.f32 1.0, %v2497_v46 }
 0xd73   : > { %2498 = vrcp.f32 %v1855_v47 }
 0xd80   : > { %v2499_v0 = vpop.eup %2498 }
 0xd81   : > { %v1857_v48 = vmul.f32 %v2499_v0, %v1790_v37 }
 0xd83   : > { %v1858_v50 = vmul.f32 %v1857_v48, %v1846_v38 }
 0xd85   : > { %v1859_v51 = vpack.c.bf16 %v1858_v50, %v1858_v50 }
 0xd87   : > { %2361 = vmatmul.mubr.msk.bf16.vlgmr.msra.gmra.mxu0 %vm1892_vm6, %v1859_v51 }
 0xe47   : > { %v1930_v52 = vpop.f32.mrf.mxu0 }
 0xe48   : > { %v1936_v53 = vadd.f32 %v1930_v52, %v3235_v13 }
 0xe49   : > { %v2362_v54 = vpop.f32.mrf.mxu0 }
 0xe4a   : > { %v1939_v55 = vsel %vm696_vm1, %v1936_v53, 0.0 }
 0xe4b   : > { %1940 = vadd.xlane.f32.xlu1 %v1939_v55  ;;  %v1933_v56 = vpop.f32.mrf.mxu0 }
 0xe4d   : > { %v2363_v57 = vpop.f32.mrf.mxu0 }
 0xed4   : > { %v1941_v58 = vpop.xlane.xlu1 %1940 }
 0xed5   : > { %v1942_v59 = vmul.f32 0.03125, %v1941_v58 }
 0xed7   : > { %v1943_v60 = vsub.f32 %v1936_v53, %v1942_v59 }
 0xed9   : > { %v1944_v61 = vmul.f32 %v1943_v60, %v1943_v60 }
 0xedb   : > { %v1945_v49 = vsel %vm696_vm1, %v1944_v61, 0.0 }
 0xedc   : > { %1946 = vadd.xlane.f32.xlu0 %v1945_v49 }
 0xf65   : > { %v1947_v62 = vpop.xlane.xlu0 %1946 }
 0xf66   : > { %v1948_v63 = vmul.f32 0.03125, %v1947_v62 }
 0xf68   : > { %v1949_v1 = vadd.f32 1e-05, %v1948_v63 }
 0xf6a   : > { %2500 = vrsqrt.f32 %v1949_v1 }
 0xf77   : > { %v2501_v2 = vpop.eup %2500 }
 0xf78   : > { %v1951_v5 = vmul.f32 %v2501_v2, %v1943_v60 }
 0xf7a   : > { %v1958_v9 = vmul.f32 %v2194_v4, %v1951_v5 }
 0xf7c   : > { %v1965_v10 = vadd.f32 %v2195_v8, %v1958_v9 }
 0xf7e   : > { %v1966_v12 = vpack.c.bf16 %v1965_v10, %v1965_v10 }
 0xf80   : > { %1968 = vst.msk [vmem:[%s652_s17] sm:$0xf] %vm1967_vm7, %v1966_v12 }
 0xf81   : > { %2649 = shalt.err (!%p2646_p13)
}
 0xf82   : > { %s2650_s15 = scalar_lea.hbm %s1981_s12, 64  ;;  %s2654_s27 = scalar_lea.hbm %s3377_s18, 128 }
 0xf83   : > { %p2651_p1 = scmp.ne.s32.totalorder %s1981_s12, %s2650_s15  ;;  %p2655_p4 = scmp.lt.s32.totalorder %s1981_s12, %s3377_s18 }
 0xf84   : > { %p2656_p6 = scmp.lt.s32.totalorder %s2654_s27, %s2650_s15 }
 0xf85   : > { %p2652_p11 = pnand %p2651_p1, %p3378_p5 }
 0xf86   : > { %p2657_p12 = por %p2656_p6, %p2655_p4 }
 0xf87   : > { %p2653_p2 = pneg %p2652_p11 }
 0xf89   : > { %p2658_p0 = pnand %p2657_p12, %p2653_p2 }
 0xf8b   : > { %2661 = shalt.err (!%p2658_p0)
}
 0xf8c   : > { %2380 = dma.vmem_to_hbm [thread:$0]  (%p3378_p5), %s1984_s23, 64, %s1981_s12, %s1970_s16  }
 0xf8d PF: > { %s3379_s30 = sld [smem:[#allocation17_spill]]  ;;  %p3382_p7 = scmp.ge.s32.totalorder %s2712_s24, 2 }
 0xf8e   : > { %s3380_s21 = sld [smem:[#allocation19_spill]] }
 0xf93   : > { %s1995_s20 = sand.u32 1, %s3379_s30  }
 0xf94   : > { %p3381_p3 = scmp.ne.s32.totalorder %s3380_s21, 0  ;;  %s1996_s19 = scalar_lea.sflag [#allocation4], %s1995_s20 }
 0xf96   : > { %p2400_p9 = pnand %p3382_p7, %p3381_p3 }
 0xf98   : > { %p2401_p8 = pneg %p2400_p9 }
 0xf9a   : > { %2695 = dma.done.wait (%p2401_p8), %s1996_s19, 64  }
 0xf9b   : > { %2697 = vsyncadd (%p2401_p8), %s1996_s19, 4294967232  ;;  %s3383_s24 = sld [smem:[#allocation20_spill]]  ;;  %s3386_s21 = smov %s2704_s22 }
 0xf9c   : > { %s3384_s25 = sld [smem:[#allocation18_spill]] }
 0xf9d   : > { %s3385_s23 = sld [smem:[#allocation21_spill]] }
 0xfa1   : > { %p33_p10 = scmp.ge.s32.totalorder %s3383_s24, 4  }
 0xfa2   : > { %s3387_s22 = smov %s3384_s25 }
 0xfa3   :  { %35 = sbr.rel (!%p33_p10) target bundleno = 15 (0xf), region = 163 }
 0xfa8   :  { %2001 = vsyncpa [#allocation3], 1 }
 0xfa9   :  { %2003 = vsyncpa [#allocation3 + $0x1], 1 }
 0xfaa   :  { %2004 = vsyncpa [#allocation6], 1 }
 0xfab   :  { %2006 = vsyncpa [#allocation6 + $0x1], 1 }
 0xfac   :  { %2007 = vsyncpa [#allocation9], 1 }
 0xfad   :  { %2008 = vsyncpa [#allocation4], 1 }
 0xfae   :  { %2010 = vsyncpa [#allocation4 + $0x1], 1 }

</bundles_post_ra>
